<compile_context>
chip_gen: v6e
topology: v6e:2x2x1
jax: 0.10.0
libtpu: 0.0.40
codegen_flags: <defaults>
</compile_context>

<pallas_src>
import numpy as np
import jax
import jax.numpy as jnp
from jax import lax
from jax.experimental import pallas as pl
from jax.experimental.pallas import tpu as pltpu

VMEM = pltpu.MemorySpace.VMEM
SMEM = pltpu.MemorySpace.SMEM


# ----------------------------------------------------------------------------
# Fused KGMC kernel: 4x RelGraphConv + EdgeClassifier + min-max, VMEM-resident
# ----------------------------------------------------------------------------
def _kgmc_fused_kernel(src_ref, dst_ref, et_ref, x_ref,
                       wrel0_ref, loop0_ref, bias0_ref,
                       wrel1_ref, loop1_ref, bias1_ref,
                       wrel2_ref, loop2_ref, bias2_ref,
                       wrel3_ref, loop3_ref, bias3_ref,
                       cls_w1_ref, cls_b1_ref, cls_w2_ref, cls_b2_ref,
                       concat_ref, w_ref,
                       hsrc_scr, hdst_scr, msg_scr, agg_scr):
    E = et_ref.shape[0]
    FIN0 = x_ref.shape[1]                     # layer-0 input width (16)
    F = loop1_ref.shape[1]                    # per-layer output width (32)

    et = et_ref[...]                          # (E, 1) int32

    # Relation-block masks, hoisted out of the per-layer code (one per distinct fin).
    # mask[e, r*fin + f] = 1.0 iff etype[e] == r.  Kept f32 (elementwise stays f32).
    def rel_mask(fin, nrel):
        col = lax.broadcasted_iota(jnp.int32, (E, nrel * fin), 1)
        lo = et * fin
        return ((col >= lo) & (col < lo + fin)).astype(jnp.float32)

    nrel0 = wrel0_ref.shape[0] // FIN0
    nrel = wrel1_ref.shape[0] // F
    mask0 = rel_mask(FIN0, nrel0)             # (E, R*FIN0)   layer 0
    mask123 = rel_mask(F, nrel)               # (E, R*F)      layers 1..3 (shared)

    def rel_conv(layer, prev_off, fin, mask_l, wrel_ref, loop_ref, bias_ref, w_col):
        """One RelGraphConv (+tanh); writes its output to concat_ref[:, layer*F:(layer+1)*F]."""
        n_r = wrel_ref.shape[0] // fin

        # -- true gather of source-node rows (no dense one-hot): per-edge dynamic-slice
        #    load; edge indices are cheap scalar reads from SMEM.
        def gather(e, c):
            s = src_ref[e]
            if prev_off is None:
                row = x_ref[pl.ds(s, 1), :]
            else:
                row = concat_ref[pl.ds(s, 1), pl.ds(prev_off, fin)]
            hsrc_scr[pl.ds(e, 1), pl.ds(0, fin)] = row
            return c
        lax.fori_loop(0, E, gather, 0)

        # -- typed linear: single K = R*fin bf16 MXU matmul on masked, tiled features.
        h_src = hsrc_scr[:, pl.ds(0, fin)]                       # (E, fin) f32
        tiled = jnp.concatenate([h_src] * n_r, axis=1)           # (E, R*fin) f32
        feat = (tiled * mask_l).astype(jnp.bfloat16)
        m = jnp.dot(feat, wrel_ref[...],
                    preferred_element_type=jnp.float32)          # (E, F) f32

        # -- per-edge weight (edges.data['w']) for layers 1..3.
        if w_col is not None:
            m = m * w_col                                        # (E, 1) broadcast

        msg_scr[...] = m

        # -- scatter-sum onto destination nodes (fn.sum): per-edge accumulate.
        agg_scr[...] = jnp.zeros_like(agg_scr)

        def scatter(e, c):
            d = dst_ref[e]
            agg_scr[pl.ds(d, 1), :] = agg_scr[pl.ds(d, 1), :] + msg_scr[pl.ds(e, 1), :]
            return c
        lax.fori_loop(0, E, scatter, 0)

        # -- bias + self-loop + tanh (all f32), store straight into the concat slice.
        if prev_off is None:
            h_full = x_ref[...]
        else:
            h_full = concat_ref[:, pl.ds(prev_off, fin)]
        out = agg_scr[...] + bias_ref[...] + jnp.dot(
            h_full.astype(jnp.bfloat16), loop_ref[...],
            preferred_element_type=jnp.float32)
        concat_ref[:, pl.ds(layer * F, F)] = jnp.tanh(out)

    # ---- layer 0 (no edge weight yet) ----
    rel_conv(0, None, FIN0, mask0, wrel0_ref, loop0_ref, bias0_ref, None)

    # ---- edge classifier on cat([x0[src], x0[dst]], 1), computed ONCE ----
    # (the reference always gathers rows < N of torch.cat(concat_states, 0), i.e.
    #  layer-0 states, and never recomputes the raw logits after layer 2, so the three
    #  edge masks / edge weights are identical).
    def cls_gather(e, c):
        s = src_ref[e]
        d = dst_ref[e]
        hsrc_scr[pl.ds(e, 1), :] = concat_ref[pl.ds(s, 1), pl.ds(0, F)]
        hdst_scr[pl.ds(e, 1), :] = concat_ref[pl.ds(d, 1), pl.ds(0, F)]
        return c
    lax.fori_loop(0, E, cls_gather, 0)

    efeat = jnp.concatenate([hsrc_scr[...], hdst_scr[...]], axis=1)      # (E, 2F) f32
    h1 = jnp.maximum(
        jnp.dot(efeat.astype(jnp.bfloat16), cls_w1_ref[...],
                preferred_element_type=jnp.float32) + cls_b1_ref[...], 0.0)
    logit = jnp.dot(h1.astype(jnp.bfloat16), cls_w2_ref[...],
                    preferred_element_type=jnp.float32) + cls_b2_ref[...]  # (E, 1)
    raw = 1.0 / (1.0 + jnp.exp(-logit))                                    # exact sigmoid
    mn = jnp.min(raw, keepdims=True)                                       # (1, 1)
    mx = jnp.max(raw, keepdims=True)
    w_col = (raw - mn) / (mx - mn + 1e-8)                                  # (E, 1)
    # TODO(synk): at large E emit this output lane-dense as (1, E) instead of (E, 1).
    w_ref[...] = w_col

    # ---- layers 1..3 reuse the same edge weight (identical in the reference) ----
    rel_conv(1, 0 * F, F, mask123, wrel1_ref, loop1_ref, bias1_ref, w_col)
    rel_conv(2, 1 * F, F, mask123, wrel2_ref, loop2_ref, bias2_ref, w_col)
    rel_conv(3, 2 * F, F, mask123, wrel3_ref, loop3_ref, bias3_ref, w_col)


# ----------------------------------------------------------------------------
# Pallas wrapper
# ----------------------------------------------------------------------------
def kgmc_fused(src, dst, etype2, x, params):
    """src/dst: (E,) int32, etype2: (E,1) int32, x: (N, in_feats) f32."""
    N = x.shape[0]
    E = src.shape[0]
    F = params["loop_0"].shape[1]
    f_total = 4 * F

    def bf(a):
        return a.astype(jnp.bfloat16)

    inputs = [src, dst, etype2, x]
    in_specs = [pl.BlockSpec(memory_space=SMEM),    # src -> scalar reads in gather loops
                pl.BlockSpec(memory_space=SMEM),    # dst -> scalar reads in scatter loops
                pl.BlockSpec(memory_space=VMEM),    # etype (vector, for the rel masks)
                pl.BlockSpec(memory_space=VMEM)]
    for l in range(4):
        w_rel = params[f"W_rel_{l}"]
        R, fin, fout = w_rel.shape
        inputs += [bf(w_rel.reshape(R * fin, fout)),   # flattened for the fused-K matmul
                   bf(params[f"loop_{l}"]),
                   params[f"bias_{l}"]]
        in_specs += [pl.BlockSpec(memory_space=VMEM)] * 3
    inputs += [bf(params["cls_w1"]), params["cls_b1"],
               bf(params["cls_w2"]), params["cls_b2"]]
    in_specs += [pl.BlockSpec(memory_space=VMEM)] * 4

    return pl.pallas_call(
        _kgmc_fused_kernel,
        out_shape=(jax.ShapeDtypeStruct((N, f_total), jnp.float32),
                   jax.ShapeDtypeStruct((E, 1), jnp.float32)),
        in_specs=in_specs,
        out_specs=(pl.BlockSpec(memory_space=VMEM),
                   pl.BlockSpec(memory_space=VMEM)),
        scratch_shapes=[
            pltpu.VMEM((E, F), jnp.float32),   # gathered src rows
            pltpu.VMEM((E, F), jnp.float32),   # gathered dst rows (classifier)
            pltpu.VMEM((E, F), jnp.float32),   # per-edge messages
            pltpu.VMEM((N, F), jnp.float32),   # destination accumulator
        ],
    )(*inputs)


# ----------------------------------------------------------------------------
# Parameter init (deterministic, synthetic)
# ----------------------------------------------------------------------------
def init_params(key, in_feats, latent, num_rels):
    dims_in = [in_feats] + latent[:-1]
    kk = jax.random.split(key, 16)
    params = {}
    idx = 0
    for l in range(4):
        fin, fout = dims_in[l], latent[l]
        params[f"W_rel_{l}"] = 0.1 * jax.random.normal(kk[idx], (num_rels, fin, fout), jnp.float32); idx += 1
        params[f"loop_{l}"] = 0.1 * jax.random.normal(kk[idx], (fin, fout), jnp.float32); idx += 1
        params[f"bias_{l}"] = jnp.zeros((1, fout), jnp.float32)       # h_bias init: zeros
    f0 = 2 * latent[0]
    params["cls_w1"] = 0.1 * jax.random.normal(kk[idx], (f0, 64), jnp.float32); idx += 1
    params["cls_b1"] = jnp.zeros((1, 64), jnp.float32)
    params["cls_w2"] = 0.1 * jax.random.normal(kk[idx], (64, 1), jnp.float32); idx += 1
    params["cls_b2"] = jnp.zeros((1, 1), jnp.float32)
    return params


# ----------------------------------------------------------------------------
# KGMC_att forward (eval mode; DropEdge is training-only)
# ----------------------------------------------------------------------------
def kgmc_att_forward(params, x, nlabel, src, dst, etype):
    # TODO(synk): DGL DropEdge transform (training only) and the node_id->index remap
    # dict are graph-container glue; here src/dst are already local node indices.
    E = src.shape[0]
    src_i = src.astype(jnp.int32)
    dst_i = dst.astype(jnp.int32)
    et2 = etype.reshape(E, 1).astype(jnp.int32)

    concat_all, w = kgmc_fused(src_i, dst_i, et2, x.astype(jnp.float32), params)
    w_flat = w.reshape(E)
    # Reference recomputes (layers 0/1) or merely re-normalizes (layer 2) the SAME raw
    # classifier output on layer-0 rows each time => the three masks are identical.
    all_edge_mask = [w_flat, w_flat, w_flat]

    F = params["loop_3"].shape[1]
    x3 = concat_all[:, -F:]

    # users / items selection (boolean mask -> indices is host glue); the tiny
    # (users * items).sum(1) reduction is left to XLA (per review: dropping the
    # standalone row_dot pallas_call saves a launch + an HBM round trip).
    user_idx = np.flatnonzero(np.asarray(nlabel[:, 0]) == 1)
    item_idx = np.flatnonzero(np.asarray(nlabel[:, 1]) == 1)
    users = jnp.take(x3, jnp.asarray(user_idx, dtype=jnp.int32), axis=0)
    items = jnp.take(x3, jnp.asarray(item_idx, dtype=jnp.int32), axis=0)
    scores = jnp.sum(users * items, axis=1)

    return scores, all_edge_mask, concat_all


# ----------------------------------------------------------------------------
if __name__ == "__main__":
    key = jax.random.PRNGKey(0)
    N, E = 16, 32
    in_feats = 16
    latent = [32, 32, 32, 32]
    num_rels = 8

    k_x, k_e, k_s, k_d, k_p = jax.random.split(key, 5)
    x = jax.random.normal(k_x, (N, in_feats), dtype=jnp.float32)
    etype = jax.random.randint(k_e, (E,), 0, num_rels, dtype=jnp.int32)
    src = jax.random.randint(k_s, (E,), 0, N, dtype=jnp.int32)
    dst = jax.random.randint(k_d, (E,), 0, N, dtype=jnp.int32)
    nlabel = np.zeros((N, 2), np.float32)
    nlabel[: N // 2, 0] = 1.0   # users
    nlabel[N // 2:, 1] = 1.0    # items

    params = init_params(k_p, in_feats, latent, num_rels)

    scores, edge_masks, concat_states = kgmc_att_forward(
        params, x, jnp.asarray(nlabel), src, dst, etype)
    jax.block_until_ready((scores, edge_masks, concat_states))

    assert scores.shape == (N // 2,)
    assert concat_states.shape == (N, sum(latent))
    assert len(edge_masks) == 3 and all(m.shape == (E,) for m in edge_masks)
    assert all(bool(jnp.all(jnp.isfinite(a))) for a in [scores, concat_states] + list(edge_masks))
    print("KERNEL_OK")
</pallas_src>

<mosaic_0001>
module attributes {stable_mosaic.version = 11 : i64} {
  func.func @_kgmc_fused_kernel(%arg0: memref<32xi32, #tpu.memory_space<smem>>, %arg1: memref<32xi32, #tpu.memory_space<smem>>, %arg2: memref<32x1xi32, #tpu.memory_space<vmem>>, %arg3: memref<16x16xf32, #tpu.memory_space<vmem>>, %arg4: memref<128x32xbf16, #tpu.memory_space<vmem>>, %arg5: memref<16x32xbf16, #tpu.memory_space<vmem>>, %arg6: memref<1x32xf32, #tpu.memory_space<vmem>>, %arg7: memref<256x32xbf16, #tpu.memory_space<vmem>>, %arg8: memref<32x32xbf16, #tpu.memory_space<vmem>>, %arg9: memref<1x32xf32, #tpu.memory_space<vmem>>, %arg10: memref<256x32xbf16, #tpu.memory_space<vmem>>, %arg11: memref<32x32xbf16, #tpu.memory_space<vmem>>, %arg12: memref<1x32xf32, #tpu.memory_space<vmem>>, %arg13: memref<256x32xbf16, #tpu.memory_space<vmem>>, %arg14: memref<32x32xbf16, #tpu.memory_space<vmem>>, %arg15: memref<1x32xf32, #tpu.memory_space<vmem>>, %arg16: memref<64x64xbf16, #tpu.memory_space<vmem>>, %arg17: memref<1x64xf32, #tpu.memory_space<vmem>>, %arg18: memref<64x1xbf16, #tpu.memory_space<vmem>>, %arg19: memref<1x1xf32, #tpu.memory_space<vmem>>, %arg20: memref<16x128xf32, #tpu.memory_space<vmem>>, %arg21: memref<32x1xf32, #tpu.memory_space<vmem>>, %arg22: memref<32x32xf32, #tpu.memory_space<vmem>>, %arg23: memref<32x32xf32, #tpu.memory_space<vmem>>, %arg24: memref<32x32xf32, #tpu.memory_space<vmem>>, %arg25: memref<16x32xf32, #tpu.memory_space<vmem>>) attributes {dimension_semantics = [], scalar_prefetch = 0 : i64, scratch_operands = 4 : i64, tpu.core_type = #tpu.core_type<tc>} {
    %c0 = arith.constant 0 : index
    %c0_0 = arith.constant 0 : index
    %0 = vector.load %arg2[%c0, %c0_0] : memref<32x1xi32, #tpu.memory_space<vmem>>, vector<32x1xi32>
    %1 = tpu.iota {dimensions = array<i32: 1>} : vector<32x128xi32>
    %c16_i32 = arith.constant 16 : i32
    %2 = vector.broadcast %c16_i32 : i32 to vector<32x1xi32>
    %3 = arith.muli %0, %2 : vector<32x1xi32>
    %4 = vector.broadcast %3 : vector<32x1xi32> to vector<32x128xi32>
    %5 = arith.cmpi sge, %1, %4 : vector<32x128xi32>
    %c16_i32_1 = arith.constant 16 : i32
    %6 = vector.broadcast %c16_i32_1 : i32 to vector<32x1xi32>
    %7 = arith.addi %3, %6 : vector<32x1xi32>
    %8 = vector.broadcast %7 : vector<32x1xi32> to vector<32x128xi32>
    %9 = arith.cmpi slt, %1, %8 : vector<32x128xi32>
    %10 = arith.andi %5, %9 : vector<32x128xi1>
    %11 = arith.extui %10 : vector<32x128xi1> to vector<32x128xi32>
    %12 = arith.sitofp %11 : vector<32x128xi32> to vector<32x128xf32>
    %13 = tpu.iota {dimensions = array<i32: 1>} : vector<32x256xi32>
    %c32_i32 = arith.constant 32 : i32
    %14 = vector.broadcast %c32_i32 : i32 to vector<32x1xi32>
    %15 = arith.muli %0, %14 : vector<32x1xi32>
    %16 = vector.broadcast %15 : vector<32x1xi32> to vector<32x256xi32>
    %17 = arith.cmpi sge, %13, %16 : vector<32x256xi32>
    %c32_i32_2 = arith.constant 32 : i32
    %18 = vector.broadcast %c32_i32_2 : i32 to vector<32x1xi32>
    %19 = arith.addi %15, %18 : vector<32x1xi32>
    %20 = vector.broadcast %19 : vector<32x1xi32> to vector<32x256xi32>
    %21 = arith.cmpi slt, %13, %20 : vector<32x256xi32>
    %22 = arith.andi %17, %21 : vector<32x256xi1>
    %23 = arith.extui %22 : vector<32x256xi1> to vector<32x256xi32>
    %24 = arith.sitofp %23 : vector<32x256xi32> to vector<32x256xf32>
    %c0_i32 = arith.constant 0 : i32
    %c32_i32_3 = arith.constant 32 : i32
    %25 = arith.addi %c0_i32, %c32_i32_3 : i32
    %c1_i32 = arith.constant 1 : i32
    scf.for %arg26 = %c0_i32 to %25 step %c1_i32  : i32 {
      %162 = arith.index_cast %arg26 : i32 to index
      %163 = memref.load %arg0[%162] : memref<32xi32, #tpu.memory_space<smem>>
      %164 = arith.index_cast %163 : i32 to index
      %c0_140 = arith.constant 0 : index
      %165 = vector.load %arg3[%164, %c0_140] : memref<16x16xf32, #tpu.memory_space<vmem>>, vector<1x16xf32>
      %166 = arith.index_cast %arg26 : i32 to index
      %c0_141 = arith.constant 0 : index
      %167 = vector.load %arg22[%166, %c0_141] : memref<32x32xf32, #tpu.memory_space<vmem>>, vector<1x16xf32>
      tpu.vector_store %arg22[%166, %c0_141], %165 {strides = array<i32>} : memref<32x32xf32, #tpu.memory_space<vmem>>, vector<1x16xf32>,
    }
    %c32_i32_4 = arith.constant 32 : i32
    %c0_5 = arith.constant 0 : index
    %c0_6 = arith.constant 0 : index
    %26 = vector.load %arg22[%c0_5, %c0_6] : memref<32x32xf32, #tpu.memory_space<vmem>>, vector<32x16xf32>
    %27 = tpu.concatenate %26, %26, %26, %26, %26, %26, %26, %26 in 1 : vector<32x16xf32>, vector<32x16xf32>, vector<32x16xf32>, vector<32x16xf32>, vector<32x16xf32>, vector<32x16xf32>, vector<32x16xf32>, vector<32x16xf32> -> vector<32x128xf32>
    %28 = arith.mulf %27, %12 : vector<32x128xf32>
    %29 = arith.truncf %28 : vector<32x128xf32> to vector<32x128xbf16>
    %c0_7 = arith.constant 0 : index
    %c0_8 = arith.constant 0 : index
    %30 = vector.load %arg4[%c0_7, %c0_8] : memref<128x32xbf16, #tpu.memory_space<vmem>>, vector<128x32xbf16>
    %cst = arith.constant dense<0.000000e+00> : vector<32x32xf32>
    %31 = tpu.matmul %29, %30, %cst {dimension_numbers = #tpu.dot_dimension_numbers<[1], [0], [0], [1], [0, 0, 1, 1], [], []>} : vector<32x128xbf16>, vector<128x32xbf16>, vector<32x32xf32> -> vector<32x32xf32>
    %c0_9 = arith.constant 0 : index
    %c0_10 = arith.constant 0 : index
    %32 = vector.load %arg24[%c0_9, %c0_10] : memref<32x32xf32, #tpu.memory_space<vmem>>, vector<32x32xf32>
    tpu.vector_store %arg24[%c0_9, %c0_10], %31 {strides = array<i32>} : memref<32x32xf32, #tpu.memory_space<vmem>>, vector<32x32xf32>,
    %cst_11 = arith.constant 0.000000e+00 : f32
    %33 = vector.broadcast %cst_11 : f32 to vector<16x32xf32>
    %c0_12 = arith.constant 0 : index
    %c0_13 = arith.constant 0 : index
    %34 = vector.load %arg25[%c0_12, %c0_13] : memref<16x32xf32, #tpu.memory_space<vmem>>, vector<16x32xf32>
    tpu.vector_store %arg25[%c0_12, %c0_13], %33 {strides = array<i32>} : memref<16x32xf32, #tpu.memory_space<vmem>>, vector<16x32xf32>,
    %c0_i32_14 = arith.constant 0 : i32
    %c32_i32_15 = arith.constant 32 : i32
    %35 = arith.addi %c0_i32_14, %c32_i32_15 : i32
    %c1_i32_16 = arith.constant 1 : i32
    scf.for %arg26 = %c0_i32_14 to %35 step %c1_i32_16  : i32 {
      %162 = arith.index_cast %arg26 : i32 to index
      %163 = memref.load %arg1[%162] : memref<32xi32, #tpu.memory_space<smem>>
      %164 = arith.index_cast %163 : i32 to index
      %c0_140 = arith.constant 0 : index
      %165 = vector.load %arg25[%164, %c0_140] : memref<16x32xf32, #tpu.memory_space<vmem>>, vector<1x32xf32>
      %166 = arith.index_cast %arg26 : i32 to index
      %c0_141 = arith.constant 0 : index
      %167 = vector.load %arg24[%166, %c0_141] : memref<32x32xf32, #tpu.memory_space<vmem>>, vector<1x32xf32>
      %168 = arith.addf %165, %167 : vector<1x32xf32>
      %169 = arith.index_cast %163 : i32 to index
      %c0_142 = arith.constant 0 : index
      %170 = vector.load %arg25[%169, %c0_142] : memref<16x32xf32, #tpu.memory_space<vmem>>, vector<1x32xf32>
      tpu.vector_store %arg25[%169, %c0_142], %168 {strides = array<i32>} : memref<16x32xf32, #tpu.memory_space<vmem>>, vector<1x32xf32>,
    }
    %c32_i32_17 = arith.constant 32 : i32
    %c0_18 = arith.constant 0 : index
    %c0_19 = arith.constant 0 : index
    %36 = vector.load %arg3[%c0_18, %c0_19] : memref<16x16xf32, #tpu.memory_space<vmem>>, vector<16x16xf32>
    %c0_20 = arith.constant 0 : index
    %c0_21 = arith.constant 0 : index
    %37 = vector.load %arg25[%c0_20, %c0_21] : memref<16x32xf32, #tpu.memory_space<vmem>>, vector<16x32xf32>
    %c0_22 = arith.constant 0 : index
    %c0_23 = arith.constant 0 : index
    %38 = vector.load %arg6[%c0_22, %c0_23] : memref<1x32xf32, #tpu.memory_space<vmem>>, vector<1x32xf32>
    %39 = vector.broadcast %38 : vector<1x32xf32> to vector<16x32xf32>
    %40 = arith.addf %37, %39 : vector<16x32xf32>
    %41 = arith.truncf %36 : vector<16x16xf32> to vector<16x16xbf16>
    %c0_24 = arith.constant 0 : index
    %c0_25 = arith.constant 0 : index
    %42 = vector.load %arg5[%c0_24, %c0_25] : memref<16x32xbf16, #tpu.memory_space<vmem>>, vector<16x32xbf16>
    %cst_26 = arith.constant dense<0.000000e+00> : vector<16x32xf32>
    %43 = tpu.matmul %41, %42, %cst_26 {dimension_numbers = #tpu.dot_dimension_numbers<[1], [0], [0], [1], [0, 0, 1, 1], [], []>} : vector<16x16xbf16>, vector<16x32xbf16>, vector<16x32xf32> -> vector<16x32xf32>
    %44 = arith.addf %40, %43 : vector<16x32xf32>
    %45 = math.tanh %44 : vector<16x32xf32>
    %c0_27 = arith.constant 0 : index
    %c0_28 = arith.constant 0 : index
    %46 = vector.load %arg20[%c0_27, %c0_28] : memref<16x128xf32, #tpu.memory_space<vmem>>, vector<16x32xf32>
    tpu.vector_store %arg20[%c0_27, %c0_28], %45 {strides = array<i32>} : memref<16x128xf32, #tpu.memory_space<vmem>>, vector<16x32xf32>,
    %c0_i32_29 = arith.constant 0 : i32
    %c32_i32_30 = arith.constant 32 : i32
    %47 = arith.addi %c0_i32_29, %c32_i32_30 : i32
    %c1_i32_31 = arith.constant 1 : i32
    scf.for %arg26 = %c0_i32_29 to %47 step %c1_i32_31  : i32 {
      %162 = arith.index_cast %arg26 : i32 to index
      %163 = memref.load %arg0[%162] : memref<32xi32, #tpu.memory_space<smem>>
      %164 = arith.index_cast %arg26 : i32 to index
      %165 = memref.load %arg1[%164] : memref<32xi32, #tpu.memory_space<smem>>
      %166 = arith.index_cast %163 : i32 to index
      %c0_140 = arith.constant 0 : index
      %167 = vector.load %arg20[%166, %c0_140] : memref<16x128xf32, #tpu.memory_space<vmem>>, vector<1x32xf32>
      %168 = arith.index_cast %arg26 : i32 to index
      %c0_141 = arith.constant 0 : index
      %169 = vector.load %arg22[%168, %c0_141] : memref<32x32xf32, #tpu.memory_space<vmem>>, vector<1x32xf32>
      tpu.vector_store %arg22[%168, %c0_141], %167 {strides = array<i32>} : memref<32x32xf32, #tpu.memory_space<vmem>>, vector<1x32xf32>,
      %170 = arith.index_cast %165 : i32 to index
      %c0_142 = arith.constant 0 : index
      %171 = vector.load %arg20[%170, %c0_142] : memref<16x128xf32, #tpu.memory_space<vmem>>, vector<1x32xf32>
      %172 = arith.index_cast %arg26 : i32 to index
      %c0_143 = arith.constant 0 : index
      %173 = vector.load %arg23[%172, %c0_143] : memref<32x32xf32, #tpu.memory_space<vmem>>, vector<1x32xf32>
      tpu.vector_store %arg23[%172, %c0_143], %171 {strides = array<i32>} : memref<32x32xf32, #tpu.memory_space<vmem>>, vector<1x32xf32>,
    }
    %c32_i32_32 = arith.constant 32 : i32
    %c0_33 = arith.constant 0 : index
    %c0_34 = arith.constant 0 : index
    %48 = vector.load %arg22[%c0_33, %c0_34] : memref<32x32xf32, #tpu.memory_space<vmem>>, vector<32x32xf32>
    %c0_35 = arith.constant 0 : index
    %c0_36 = arith.constant 0 : index
    %49 = vector.load %arg23[%c0_35, %c0_36] : memref<32x32xf32, #tpu.memory_space<vmem>>, vector<32x32xf32>
    %50 = tpu.concatenate %48, %49 in 1 : vector<32x32xf32>, vector<32x32xf32> -> vector<32x64xf32>
    %51 = arith.truncf %50 : vector<32x64xf32> to vector<32x64xbf16>
    %c0_37 = arith.constant 0 : index
    %c0_38 = arith.constant 0 : index
    %52 = vector.load %arg16[%c0_37, %c0_38] : memref<64x64xbf16, #tpu.memory_space<vmem>>, vector<64x64xbf16>
    %cst_39 = arith.constant dense<0.000000e+00> : vector<32x64xf32>
    %53 = tpu.matmul %51, %52, %cst_39 {dimension_numbers = #tpu.dot_dimension_numbers<[1], [0], [0], [1], [0, 0, 1, 1], [], []>} : vector<32x64xbf16>, vector<64x64xbf16>, vector<32x64xf32> -> vector<32x64xf32>
    %c0_40 = arith.constant 0 : index
    %c0_41 = arith.constant 0 : index
    %54 = vector.load %arg17[%c0_40, %c0_41] : memref<1x64xf32, #tpu.memory_space<vmem>>, vector<1x64xf32>
    %55 = vector.broadcast %54 : vector<1x64xf32> to vector<32x64xf32>
    %56 = arith.addf %53, %55 : vector<32x64xf32>
    %cst_42 = arith.constant 0.000000e+00 : f32
    %57 = vector.broadcast %cst_42 : f32 to vector<32x64xf32>
    %58 = arith.maximumf %56, %57 : vector<32x64xf32>
    %59 = arith.truncf %58 : vector<32x64xf32> to vector<32x64xbf16>
    %c0_43 = arith.constant 0 : index
    %c0_44 = arith.constant 0 : index
    %60 = vector.load %arg18[%c0_43, %c0_44] : memref<64x1xbf16, #tpu.memory_space<vmem>>, vector<64x1xbf16>
    %cst_45 = arith.constant dense<0.000000e+00> : vector<32x1xf32>
    %61 = tpu.matmul %59, %60, %cst_45 {dimension_numbers = #tpu.dot_dimension_numbers<[1], [0], [0], [1], [0, 0, 1, 1], [], []>} : vector<32x64xbf16>, vector<64x1xbf16>, vector<32x1xf32> -> vector<32x1xf32>
    %c0_46 = arith.constant 0 : index
    %c0_47 = arith.constant 0 : index
    %62 = vector.load %arg19[%c0_46, %c0_47] : memref<1x1xf32, #tpu.memory_space<vmem>>, vector<1x1xf32>
    %63 = vector.broadcast %62 : vector<1x1xf32> to vector<32x1xf32>
    %64 = arith.addf %61, %63 : vector<32x1xf32>
    %cst_48 = arith.constant 0.000000e+00 : f32
    %65 = vector.broadcast %cst_48 : f32 to vector<32x1xf32>
    %66 = arith.subf %65, %64 : vector<32x1xf32>
    %67 = math.exp %66 : vector<32x1xf32>
    %cst_49 = arith.constant 1.000000e+00 : f32
    %68 = vector.broadcast %cst_49 : f32 to vector<32x1xf32>
    %69 = arith.addf %68, %67 : vector<32x1xf32>
    %cst_50 = arith.constant 1.000000e+00 : f32
    %70 = vector.broadcast %cst_50 : f32 to vector<32x1xf32>
    %71 = arith.divf %70, %69 : vector<32x1xf32>
    %72 = vector.shape_cast %71 : vector<32x1xf32> to vector<1x32x1xf32>
    %cst_51 = arith.constant dense<0x7F800000> : vector<1xf32>
    %73 = vector.multi_reduction <minimumf>, %72, %cst_51 [1, 2] : vector<1x32x1xf32> to vector<1xf32>
    %74 = vector.shape_cast %73 : vector<1xf32> to vector<1x1x1xf32>
    %75 = vector.extract %74[0, 0, 0] : f32 from vector<1x1x1xf32>
    %76 = vector.broadcast %75 : f32 to vector<1x1xf32>
    %77 = vector.shape_cast %71 : vector<32x1xf32> to vector<1x32x1xf32>
    %cst_52 = arith.constant dense<0xFF800000> : vector<1xf32>
    %78 = vector.multi_reduction <maximumf>, %77, %cst_52 [1, 2] : vector<1x32x1xf32> to vector<1xf32>
    %79 = vector.shape_cast %78 : vector<1xf32> to vector<1x1x1xf32>
    %80 = vector.extract %79[0, 0, 0] : f32 from vector<1x1x1xf32>
    %81 = vector.broadcast %80 : f32 to vector<1x1xf32>
    %82 = vector.broadcast %76 : vector<1x1xf32> to vector<32x1xf32>
    %83 = arith.subf %71, %82 : vector<32x1xf32>
    %84 = arith.subf %81, %76 : vector<1x1xf32>
    %cst_53 = arith.constant 9.99999993E-9 : f32
    %85 = vector.broadcast %cst_53 : f32 to vector<1x1xf32>
    %86 = arith.addf %84, %85 : vector<1x1xf32>
    %87 = vector.broadcast %86 : vector<1x1xf32> to vector<32x1xf32>
    %88 = arith.divf %83, %87 : vector<32x1xf32>
    %c0_54 = arith.constant 0 : index
    %c0_55 = arith.constant 0 : index
    %89 = vector.load %arg21[%c0_54, %c0_55] : memref<32x1xf32, #tpu.memory_space<vmem>>, vector<32x1xf32>
    tpu.vector_store %arg21[%c0_54, %c0_55], %88 {strides = array<i32>} : memref<32x1xf32, #tpu.memory_space<vmem>>, vector<32x1xf32>,
    %c0_i32_56 = arith.constant 0 : i32
    %c32_i32_57 = arith.constant 32 : i32
    %90 = arith.addi %c0_i32_56, %c32_i32_57 : i32
    %c1_i32_58 = arith.constant 1 : i32
    scf.for %arg26 = %c0_i32_56 to %90 step %c1_i32_58  : i32 {
      %162 = arith.index_cast %arg26 : i32 to index
      %163 = memref.load %arg0[%162] : memref<32xi32, #tpu.memory_space<smem>>
      %164 = arith.index_cast %163 : i32 to index
      %c0_140 = arith.constant 0 : index
      %165 = vector.load %arg20[%164, %c0_140] : memref<16x128xf32, #tpu.memory_space<vmem>>, vector<1x32xf32>
      %166 = arith.index_cast %arg26 : i32 to index
      %c0_141 = arith.constant 0 : index
      %167 = vector.load %arg22[%166, %c0_141] : memref<32x32xf32, #tpu.memory_space<vmem>>, vector<1x32xf32>
      tpu.vector_store %arg22[%166, %c0_141], %165 {strides = array<i32>} : memref<32x32xf32, #tpu.memory_space<vmem>>, vector<1x32xf32>,
    }
    %c32_i32_59 = arith.constant 32 : i32
    %c0_60 = arith.constant 0 : index
    %c0_61 = arith.constant 0 : index
    %91 = vector.load %arg22[%c0_60, %c0_61] : memref<32x32xf32, #tpu.memory_space<vmem>>, vector<32x32xf32>
    %92 = tpu.concatenate %91, %91, %91, %91, %91, %91, %91, %91 in 1 : vector<32x32xf32>, vector<32x32xf32>, vector<32x32xf32>, vector<32x32xf32>, vector<32x32xf32>, vector<32x32xf32>, vector<32x32xf32>, vector<32x32xf32> -> vector<32x256xf32>
    %93 = arith.mulf %92, %24 : vector<32x256xf32>
    %94 = arith.truncf %93 : vector<32x256xf32> to vector<32x256xbf16>
    %c0_62 = arith.constant 0 : index
    %c0_63 = arith.constant 0 : index
    %95 = vector.load %arg7[%c0_62, %c0_63] : memref<256x32xbf16, #tpu.memory_space<vmem>>, vector<256x32xbf16>
    %cst_64 = arith.constant dense<0.000000e+00> : vector<32x32xf32>
    %96 = tpu.matmul %94, %95, %cst_64 {dimension_numbers = #tpu.dot_dimension_numbers<[1], [0], [0], [1], [0, 0, 1, 1], [], []>} : vector<32x256xbf16>, vector<256x32xbf16>, vector<32x32xf32> -> vector<32x32xf32>
    %97 = vector.broadcast %88 : vector<32x1xf32> to vector<32x32xf32>
    %98 = arith.mulf %96, %97 : vector<32x32xf32>
    %c0_65 = arith.constant 0 : index
    %c0_66 = arith.constant 0 : index
    %99 = vector.load %arg24[%c0_65, %c0_66] : memref<32x32xf32, #tpu.memory_space<vmem>>, vector<32x32xf32>
    tpu.vector_store %arg24[%c0_65, %c0_66], %98 {strides = array<i32>} : memref<32x32xf32, #tpu.memory_space<vmem>>, vector<32x32xf32>,
    %cst_67 = arith.constant 0.000000e+00 : f32
    %100 = vector.broadcast %cst_67 : f32 to vector<16x32xf32>
    %c0_68 = arith.constant 0 : index
    %c0_69 = arith.constant 0 : index
    %101 = vector.load %arg25[%c0_68, %c0_69] : memref<16x32xf32, #tpu.memory_space<vmem>>, vector<16x32xf32>
    tpu.vector_store %arg25[%c0_68, %c0_69], %100 {strides = array<i32>} : memref<16x32xf32, #tpu.memory_space<vmem>>, vector<16x32xf32>,
    %c0_i32_70 = arith.constant 0 : i32
    %c32_i32_71 = arith.constant 32 : i32
    %102 = arith.addi %c0_i32_70, %c32_i32_71 : i32
    %c1_i32_72 = arith.constant 1 : i32
    scf.for %arg26 = %c0_i32_70 to %102 step %c1_i32_72  : i32 {
      %162 = arith.index_cast %arg26 : i32 to index
      %163 = memref.load %arg1[%162] : memref<32xi32, #tpu.memory_space<smem>>
      %164 = arith.index_cast %163 : i32 to index
      %c0_140 = arith.constant 0 : index
      %165 = vector.load %arg25[%164, %c0_140] : memref<16x32xf32, #tpu.memory_space<vmem>>, vector<1x32xf32>
      %166 = arith.index_cast %arg26 : i32 to index
      %c0_141 = arith.constant 0 : index
      %167 = vector.load %arg24[%166, %c0_141] : memref<32x32xf32, #tpu.memory_space<vmem>>, vector<1x32xf32>
      %168 = arith.addf %165, %167 : vector<1x32xf32>
      %169 = arith.index_cast %163 : i32 to index
      %c0_142 = arith.constant 0 : index
      %170 = vector.load %arg25[%169, %c0_142] : memref<16x32xf32, #tpu.memory_space<vmem>>, vector<1x32xf32>
      tpu.vector_store %arg25[%169, %c0_142], %168 {strides = array<i32>} : memref<16x32xf32, #tpu.memory_space<vmem>>, vector<1x32xf32>,
    }
    %c32_i32_73 = arith.constant 32 : i32
    %c0_74 = arith.constant 0 : index
    %c0_75 = arith.constant 0 : index
    %103 = vector.load %arg20[%c0_74, %c0_75] : memref<16x128xf32, #tpu.memory_space<vmem>>, vector<16x32xf32>
    %c0_76 = arith.constant 0 : index
    %c0_77 = arith.constant 0 : index
    %104 = vector.load %arg25[%c0_76, %c0_77] : memref<16x32xf32, #tpu.memory_space<vmem>>, vector<16x32xf32>
    %c0_78 = arith.constant 0 : index
    %c0_79 = arith.constant 0 : index
    %105 = vector.load %arg9[%c0_78, %c0_79] : memref<1x32xf32, #tpu.memory_space<vmem>>, vector<1x32xf32>
    %106 = vector.broadcast %105 : vector<1x32xf32> to vector<16x32xf32>
    %107 = arith.addf %104, %106 : vector<16x32xf32>
    %108 = arith.truncf %103 : vector<16x32xf32> to vector<16x32xbf16>
    %c0_80 = arith.constant 0 : index
    %c0_81 = arith.constant 0 : index
    %109 = vector.load %arg8[%c0_80, %c0_81] : memref<32x32xbf16, #tpu.memory_space<vmem>>, vector<32x32xbf16>
    %cst_82 = arith.constant dense<0.000000e+00> : vector<16x32xf32>
    %110 = tpu.matmul %108, %109, %cst_82 {dimension_numbers = #tpu.dot_dimension_numbers<[1], [0], [0], [1], [0, 0, 1, 1], [], []>} : vector<16x32xbf16>, vector<32x32xbf16>, vector<16x32xf32> -> vector<16x32xf32>
    %111 = arith.addf %107, %110 : vector<16x32xf32>
    %112 = math.tanh %111 : vector<16x32xf32>
    %c0_83 = arith.constant 0 : index
    %c32 = arith.constant 32 : index
    %113 = vector.load %arg20[%c0_83, %c32] : memref<16x128xf32, #tpu.memory_space<vmem>>, vector<16x32xf32>
    tpu.vector_store %arg20[%c0_83, %c32], %112 {strides = array<i32>} : memref<16x128xf32, #tpu.memory_space<vmem>>, vector<16x32xf32>,
    %c0_i32_84 = arith.constant 0 : i32
    %c32_i32_85 = arith.constant 32 : i32
    %114 = arith.addi %c0_i32_84, %c32_i32_85 : i32
    %c1_i32_86 = arith.constant 1 : i32
    scf.for %arg26 = %c0_i32_84 to %114 step %c1_i32_86  : i32 {
      %162 = arith.index_cast %arg26 : i32 to index
      %163 = memref.load %arg0[%162] : memref<32xi32, #tpu.memory_space<smem>>
      %164 = arith.index_cast %163 : i32 to index
      %c32_140 = arith.constant 32 : index
      %165 = vector.load %arg20[%164, %c32_140] : memref<16x128xf32, #tpu.memory_space<vmem>>, vector<1x32xf32>
      %166 = arith.index_cast %arg26 : i32 to index
      %c0_141 = arith.constant 0 : index
      %167 = vector.load %arg22[%166, %c0_141] : memref<32x32xf32, #tpu.memory_space<vmem>>, vector<1x32xf32>
      tpu.vector_store %arg22[%166, %c0_141], %165 {strides = array<i32>} : memref<32x32xf32, #tpu.memory_space<vmem>>, vector<1x32xf32>,
    }
    %c32_i32_87 = arith.constant 32 : i32
    %c0_88 = arith.constant 0 : index
    %c0_89 = arith.constant 0 : index
    %115 = vector.load %arg22[%c0_88, %c0_89] : memref<32x32xf32, #tpu.memory_space<vmem>>, vector<32x32xf32>
    %116 = tpu.concatenate %115, %115, %115, %115, %115, %115, %115, %115 in 1 : vector<32x32xf32>, vector<32x32xf32>, vector<32x32xf32>, vector<32x32xf32>, vector<32x32xf32>, vector<32x32xf32>, vector<32x32xf32>, vector<32x32xf32> -> vector<32x256xf32>
    %117 = arith.mulf %116, %24 : vector<32x256xf32>
    %118 = arith.truncf %117 : vector<32x256xf32> to vector<32x256xbf16>
    %c0_90 = arith.constant 0 : index
    %c0_91 = arith.constant 0 : index
    %119 = vector.load %arg10[%c0_90, %c0_91] : memref<256x32xbf16, #tpu.memory_space<vmem>>, vector<256x32xbf16>
    %cst_92 = arith.constant dense<0.000000e+00> : vector<32x32xf32>
    %120 = tpu.matmul %118, %119, %cst_92 {dimension_numbers = #tpu.dot_dimension_numbers<[1], [0], [0], [1], [0, 0, 1, 1], [], []>} : vector<32x256xbf16>, vector<256x32xbf16>, vector<32x32xf32> -> vector<32x32xf32>
    %121 = vector.broadcast %88 : vector<32x1xf32> to vector<32x32xf32>
    %122 = arith.mulf %120, %121 : vector<32x32xf32>
    %c0_93 = arith.constant 0 : index
    %c0_94 = arith.constant 0 : index
    %123 = vector.load %arg24[%c0_93, %c0_94] : memref<32x32xf32, #tpu.memory_space<vmem>>, vector<32x32xf32>
    tpu.vector_store %arg24[%c0_93, %c0_94], %122 {strides = array<i32>} : memref<32x32xf32, #tpu.memory_space<vmem>>, vector<32x32xf32>,
    %cst_95 = arith.constant 0.000000e+00 : f32
    %124 = vector.broadcast %cst_95 : f32 to vector<16x32xf32>
    %c0_96 = arith.constant 0 : index
    %c0_97 = arith.constant 0 : index
    %125 = vector.load %arg25[%c0_96, %c0_97] : memref<16x32xf32, #tpu.memory_space<vmem>>, vector<16x32xf32>
    tpu.vector_store %arg25[%c0_96, %c0_97], %124 {strides = array<i32>} : memref<16x32xf32, #tpu.memory_space<vmem>>, vector<16x32xf32>,
    %c0_i32_98 = arith.constant 0 : i32
    %c32_i32_99 = arith.constant 32 : i32
    %126 = arith.addi %c0_i32_98, %c32_i32_99 : i32
    %c1_i32_100 = arith.constant 1 : i32
    scf.for %arg26 = %c0_i32_98 to %126 step %c1_i32_100  : i32 {
      %162 = arith.index_cast %arg26 : i32 to index
      %163 = memref.load %arg1[%162] : memref<32xi32, #tpu.memory_space<smem>>
      %164 = arith.index_cast %163 : i32 to index
      %c0_140 = arith.constant 0 : index
      %165 = vector.load %arg25[%164, %c0_140] : memref<16x32xf32, #tpu.memory_space<vmem>>, vector<1x32xf32>
      %166 = arith.index_cast %arg26 : i32 to index
      %c0_141 = arith.constant 0 : index
      %167 = vector.load %arg24[%166, %c0_141] : memref<32x32xf32, #tpu.memory_space<vmem>>, vector<1x32xf32>
      %168 = arith.addf %165, %167 : vector<1x32xf32>
      %169 = arith.index_cast %163 : i32 to index
      %c0_142 = arith.constant 0 : index
      %170 = vector.load %arg25[%169, %c0_142] : memref<16x32xf32, #tpu.memory_space<vmem>>, vector<1x32xf32>
      tpu.vector_store %arg25[%169, %c0_142], %168 {strides = array<i32>} : memref<16x32xf32, #tpu.memory_space<vmem>>, vector<1x32xf32>,
    }
    %c32_i32_101 = arith.constant 32 : i32
    %c0_102 = arith.constant 0 : index
    %c32_103 = arith.constant 32 : index
    %127 = vector.load %arg20[%c0_102, %c32_103] : memref<16x128xf32, #tpu.memory_space<vmem>>, vector<16x32xf32>
    %c0_104 = arith.constant 0 : index
    %c0_105 = arith.constant 0 : index
    %128 = vector.load %arg25[%c0_104, %c0_105] : memref<16x32xf32, #tpu.memory_space<vmem>>, vector<16x32xf32>
    %c0_106 = arith.constant 0 : index
    %c0_107 = arith.constant 0 : index
    %129 = vector.load %arg12[%c0_106, %c0_107] : memref<1x32xf32, #tpu.memory_space<vmem>>, vector<1x32xf32>
    %130 = vector.broadcast %129 : vector<1x32xf32> to vector<16x32xf32>
    %131 = arith.addf %128, %130 : vector<16x32xf32>
    %132 = arith.truncf %127 : vector<16x32xf32> to vector<16x32xbf16>
    %c0_108 = arith.constant 0 : index
    %c0_109 = arith.constant 0 : index
    %133 = vector.load %arg11[%c0_108, %c0_109] : memref<32x32xbf16, #tpu.memory_space<vmem>>, vector<32x32xbf16>
    %cst_110 = arith.constant dense<0.000000e+00> : vector<16x32xf32>
    %134 = tpu.matmul %132, %133, %cst_110 {dimension_numbers = #tpu.dot_dimension_numbers<[1], [0], [0], [1], [0, 0, 1, 1], [], []>} : vector<16x32xbf16>, vector<32x32xbf16>, vector<16x32xf32> -> vector<16x32xf32>
    %135 = arith.addf %131, %134 : vector<16x32xf32>
    %136 = math.tanh %135 : vector<16x32xf32>
    %c0_111 = arith.constant 0 : index
    %c64 = arith.constant 64 : index
    %137 = vector.load %arg20[%c0_111, %c64] : memref<16x128xf32, #tpu.memory_space<vmem>>, vector<16x32xf32>
    tpu.vector_store %arg20[%c0_111, %c64], %136 {strides = array<i32>} : memref<16x128xf32, #tpu.memory_space<vmem>>, vector<16x32xf32>,
    %c0_i32_112 = arith.constant 0 : i32
    %c32_i32_113 = arith.constant 32 : i32
    %138 = arith.addi %c0_i32_112, %c32_i32_113 : i32
    %c1_i32_114 = arith.constant 1 : i32
    scf.for %arg26 = %c0_i32_112 to %138 step %c1_i32_114  : i32 {
      %162 = arith.index_cast %arg26 : i32 to index
      %163 = memref.load %arg0[%162] : memref<32xi32, #tpu.memory_space<smem>>
      %164 = arith.index_cast %163 : i32 to index
      %c64_140 = arith.constant 64 : index
      %165 = vector.load %arg20[%164, %c64_140] : memref<16x128xf32, #tpu.memory_space<vmem>>, vector<1x32xf32>
      %166 = arith.index_cast %arg26 : i32 to index
      %c0_141 = arith.constant 0 : index
      %167 = vector.load %arg22[%166, %c0_141] : memref<32x32xf32, #tpu.memory_space<vmem>>, vector<1x32xf32>
      tpu.vector_store %arg22[%166, %c0_141], %165 {strides = array<i32>} : memref<32x32xf32, #tpu.memory_space<vmem>>, vector<1x32xf32>,
    }
    %c32_i32_115 = arith.constant 32 : i32
    %c0_116 = arith.constant 0 : index
    %c0_117 = arith.constant 0 : index
    %139 = vector.load %arg22[%c0_116, %c0_117] : memref<32x32xf32, #tpu.memory_space<vmem>>, vector<32x32xf32>
    %140 = tpu.concatenate %139, %139, %139, %139, %139, %139, %139, %139 in 1 : vector<32x32xf32>, vector<32x32xf32>, vector<32x32xf32>, vector<32x32xf32>, vector<32x32xf32>, vector<32x32xf32>, vector<32x32xf32>, vector<32x32xf32> -> vector<32x256xf32>
    %141 = arith.mulf %140, %24 : vector<32x256xf32>
    %142 = arith.truncf %141 : vector<32x256xf32> to vector<32x256xbf16>
    %c0_118 = arith.constant 0 : index
    %c0_119 = arith.constant 0 : index
    %143 = vector.load %arg13[%c0_118, %c0_119] : memref<256x32xbf16, #tpu.memory_space<vmem>>, vector<256x32xbf16>
    %cst_120 = arith.constant dense<0.000000e+00> : vector<32x32xf32>
    %144 = tpu.matmul %142, %143, %cst_120 {dimension_numbers = #tpu.dot_dimension_numbers<[1], [0], [0], [1], [0, 0, 1, 1], [], []>} : vector<32x256xbf16>, vector<256x32xbf16>, vector<32x32xf32> -> vector<32x32xf32>
    %145 = vector.broadcast %88 : vector<32x1xf32> to vector<32x32xf32>
    %146 = arith.mulf %144, %145 : vector<32x32xf32>
    %c0_121 = arith.constant 0 : index
    %c0_122 = arith.constant 0 : index
    %147 = vector.load %arg24[%c0_121, %c0_122] : memref<32x32xf32, #tpu.memory_space<vmem>>, vector<32x32xf32>
    tpu.vector_store %arg24[%c0_121, %c0_122], %146 {strides = array<i32>} : memref<32x32xf32, #tpu.memory_space<vmem>>, vector<32x32xf32>,
    %cst_123 = arith.constant 0.000000e+00 : f32
    %148 = vector.broadcast %cst_123 : f32 to vector<16x32xf32>
    %c0_124 = arith.constant 0 : index
    %c0_125 = arith.constant 0 : index
    %149 = vector.load %arg25[%c0_124, %c0_125] : memref<16x32xf32, #tpu.memory_space<vmem>>, vector<16x32xf32>
    tpu.vector_store %arg25[%c0_124, %c0_125], %148 {strides = array<i32>} : memref<16x32xf32, #tpu.memory_space<vmem>>, vector<16x32xf32>,
    %c0_i32_126 = arith.constant 0 : i32
    %c32_i32_127 = arith.constant 32 : i32
    %150 = arith.addi %c0_i32_126, %c32_i32_127 : i32
    %c1_i32_128 = arith.constant 1 : i32
    scf.for %arg26 = %c0_i32_126 to %150 step %c1_i32_128  : i32 {
      %162 = arith.index_cast %arg26 : i32 to index
      %163 = memref.load %arg1[%162] : memref<32xi32, #tpu.memory_space<smem>>
      %164 = arith.index_cast %163 : i32 to index
      %c0_140 = arith.constant 0 : index
      %165 = vector.load %arg25[%164, %c0_140] : memref<16x32xf32, #tpu.memory_space<vmem>>, vector<1x32xf32>
      %166 = arith.index_cast %arg26 : i32 to index
      %c0_141 = arith.constant 0 : index
      %167 = vector.load %arg24[%166, %c0_141] : memref<32x32xf32, #tpu.memory_space<vmem>>, vector<1x32xf32>
      %168 = arith.addf %165, %167 : vector<1x32xf32>
      %169 = arith.index_cast %163 : i32 to index
      %c0_142 = arith.constant 0 : index
      %170 = vector.load %arg25[%169, %c0_142] : memref<16x32xf32, #tpu.memory_space<vmem>>, vector<1x32xf32>
      tpu.vector_store %arg25[%169, %c0_142], %168 {strides = array<i32>} : memref<16x32xf32, #tpu.memory_space<vmem>>, vector<1x32xf32>,
    }
    %c32_i32_129 = arith.constant 32 : i32
    %c0_130 = arith.constant 0 : index
    %c64_131 = arith.constant 64 : index
    %151 = vector.load %arg20[%c0_130, %c64_131] : memref<16x128xf32, #tpu.memory_space<vmem>>, vector<16x32xf32>
    %c0_132 = arith.constant 0 : index
    %c0_133 = arith.constant 0 : index
    %152 = vector.load %arg25[%c0_132, %c0_133] : memref<16x32xf32, #tpu.memory_space<vmem>>, vector<16x32xf32>
    %c0_134 = arith.constant 0 : index
    %c0_135 = arith.constant 0 : index
    %153 = vector.load %arg15[%c0_134, %c0_135] : memref<1x32xf32, #tpu.memory_space<vmem>>, vector<1x32xf32>
    %154 = vector.broadcast %153 : vector<1x32xf32> to vector<16x32xf32>
    %155 = arith.addf %152, %154 : vector<16x32xf32>
    %156 = arith.truncf %151 : vector<16x32xf32> to vector<16x32xbf16>
    %c0_136 = arith.constant 0 : index
    %c0_137 = arith.constant 0 : index
    %157 = vector.load %arg14[%c0_136, %c0_137] : memref<32x32xbf16, #tpu.memory_space<vmem>>, vector<32x32xbf16>
    %cst_138 = arith.constant dense<0.000000e+00> : vector<16x32xf32>
    %158 = tpu.matmul %156, %157, %cst_138 {dimension_numbers = #tpu.dot_dimension_numbers<[1], [0], [0], [1], [0, 0, 1, 1], [], []>} : vector<16x32xbf16>, vector<32x32xbf16>, vector<16x32xf32> -> vector<16x32xf32>
    %159 = arith.addf %155, %158 : vector<16x32xf32>
    %160 = math.tanh %159 : vector<16x32xf32>
    %c0_139 = arith.constant 0 : index
    %c96 = arith.constant 96 : index
    %161 = vector.load %arg20[%c0_139, %c96] : memref<16x128xf32, #tpu.memory_space<vmem>>, vector<16x32xf32>
    tpu.vector_store %arg20[%c0_139, %c96], %160 {strides = array<i32>} : memref<16x128xf32, #tpu.memory_space<vmem>>, vector<16x32xf32>,
    return
  }
}

</mosaic_0001>

<bundles_post_ra>
// kernel: tpu_custom_call.1
= control target key start
LH: loop header
LB: loop body
LE: loop exit
PB: predicated region body
PF: predicated region fallthrough
CT: control target
= control target key end

     0   :  { %s3493_s0 = inlined_call_operand.vmem [shape: s32[32], index: 0, kind: input, shape index: {}]   ;;  %s3494_s1 = inlined_call_operand.vmem [shape: s32[32], index: 1, kind: input, shape index: {}]   ;;  %s3495_s2 = inlined_call_operand.vmem [shape: s32[32,1], index: 2, kind: input, shape index: {}]   ;;  %s3496_s3 = inlined_call_operand.vmem [shape: f32[16,16], index: 3, kind: input, shape index: {}]   ;;  %s3497_s4 = inlined_call_operand.vmem [shape: bf16[128,32], index: 4, kind: input, shape index: {}]   ;;  %s3498_s5 = inlined_call_operand.vmem [shape: bf16[16,32], index: 5, kind: input, shape index: {}]   ;;  %s3499_s6 = inlined_call_operand.vmem [shape: f32[1,32], index: 6, kind: input, shape index: {}]   ;;  %s3500_s7 = inlined_call_operand.vmem [shape: bf16[256,32], index: 7, kind: input, shape index: {}]   ;;  %s3501_s8 = inlined_call_operand.vmem [shape: bf16[32,32], index: 8, kind: input, shape index: {}]   ;;  %s3502_s9 = inlined_call_operand.vmem [shape: f32[1,32], index: 9, kind: input, shape index: {}]   ;;  %s3503_s10 = inlined_call_operand.vmem [shape: bf16[256,32], index: 10, kind: input, shape index: {}]   ;;  %s3504_s11 = inlined_call_operand.vmem [shape: bf16[32,32], index: 11, kind: input, shape index: {}]   ;;  %s3505_s12 = inlined_call_operand.vmem [shape: f32[1,32], index: 12, kind: input, shape index: {}]   ;;  %s3506_s13 = inlined_call_operand.vmem [shape: bf16[256,32], index: 13, kind: input, shape index: {}]   ;;  %s3507_s14 = inlined_call_operand.vmem [shape: bf16[32,32], index: 14, kind: input, shape index: {}]   ;;  %s3508_s15 = inlined_call_operand.vmem [shape: f32[1,32], index: 15, kind: input, shape index: {}]   ;;  %s3509_s16 = inlined_call_operand.vmem [shape: bf16[64,64], index: 16, kind: input, shape index: {}]   ;;  %s3510_s17 = inlined_call_operand.vmem [shape: f32[1,64], index: 17, kind: input, shape index: {}]   ;;  %s3511_s18 = inlined_call_operand.vmem [shape: bf16[64,1], index: 18, kind: input, shape index: {}]   ;;  %s3512_s19 = inlined_call_operand.<no memory space> [shape: f32[1,1], index: 19, kind: input, shape index: {}]   ;;  %s3513_s20 = inlined_call_operand.hbm [shape: f32[16,128], index: 20, kind: output, shape index: {0}]   ;;  %s3514_s21 = inlined_call_operand.vmem [shape: f32[32,1], index: 21, kind: output, shape index: {1}]  }
   0x1   :  { %3518 = sst [smem:[#allocation16_spill]] %s3493_s0  ;;  %v27_v0 = vstv %s3512_s19 }
   0x2   :  { %3519 = sst [smem:[#allocation17_spill]] %s3494_s1  ;;  %28 = vst [vmem:[#allocation6] sm:$0x1] %v27_v0 }
   0x3   :  { %3520 = sst [smem:[#allocation18_spill]] %s3495_s2 }
   0x4   :  { %3521 = sst [smem:[#allocation19_spill]] %s3496_s3 }
   0x5   :  { %3522 = sst [smem:[#allocation20_spill]] %s3497_s4 }
   0x6   :  { %3523 = sst [smem:[#allocation21_spill]] %s3498_s5 }
   0x7   :  { %29 = vsyncpa [#allocation9], 0 }
   0x8   :  { %30 = vsyncpa [#allocation11], 0 }
   0x9   :  { %31 = vsyncpa [#allocation8], 0  ;;  %s3524_s3 = sld [smem:[#allocation16_spill]] }
   0xa   :  { %s3525_s4 = sld [smem:[#allocation17_spill]] }
   0xf   :  { %s38_s28 = sshll.u32 %s3524_s3, 4  ;;  %s39_s28 = int_to_ptr.vmem [resolvable:$true] %s38_s28 }
  0x10   :  { %s48_s30 = sshll.u32 %s3525_s4, 4  ;;  %s2623_s5 = scalar_lea.vmem %s39_s28, 16  ;;  %s49_s30 = int_to_ptr.vmem [resolvable:$true] %s48_s30 }
  0x11   :  { %p2624_p0 = scmp.ne.s32.totalorder %s39_s28, %s2623_s5  ;;  %p2628_p1 = scmp.lt.s32.totalorder %s39_s28, %s39_s28 }
  0x12   :  { %p2629_p2 = scmp.lt.s32.totalorder %s2623_s5, %s2623_s5 }
  0x14   :  { %p2630_p3 = por %p2629_p2, %p2628_p1 }
  0x16   :  { %p2631_p4 = pnand %p2630_p3, %p2624_p0 }
  0x18   :  { %2634 = shalt.err (!%p2631_p4)
}
  0x19   :  { %s2745_s19 = smov [#allocation7]   ;;  %s2635_s22 = scalar_lea.vmem %s49_s30, 16 }
  0x1a   :  { %41 = dma.vmem_to_smem %s39_s28, 16, %s2745_s19, [#allocation9]  }
  0x1b   :  { %p2636_p5 = scmp.ne.s32.totalorder %s49_s30, %s2635_s22  ;;  %p2640_p6 = scmp.lt.s32.totalorder %s49_s30, %s49_s30 }
  0x1c   :  { %p2641_p7 = scmp.lt.s32.totalorder %s2635_s22, %s2635_s22 }
  0x1e   :  { %p2642_p8 = por %p2641_p7, %p2640_p6 }
  0x20   :  { %p2643_p9 = pnand %p2642_p8, %p2636_p5 }
  0x22   :  { %2646 = shalt.err (!%p2643_p9)
}
  0x23   :  { %s2746_s23 = smov [#allocation10]  }
  0x24   :  { %51 = dma.vmem_to_smem %s49_s30, 16, %s2746_s23, [#allocation11]  }
  0x25   :  { %2703 = dma.done.wait [#allocation9], 16  }
  0x26   :  { %2704 = vsyncadd [#allocation9], 4294967280 }
  0x27   :  { %2705 = dma.done.wait [#allocation11], 16  }
  0x28   :  { %2706 = vsyncadd [#allocation11], 4294967280 }
  0x29   :  { %94 = sfence }
  0x2a   :  { %s3526_s2 = sld [smem:[#allocation18_spill]]  ;;  %v2747_v4 = vmov 0   ;;  %v100_v24 = vlaneseq  ;;  %v2748_v30 = vmov 0.0   ;;  %s2709_s0 = smov 0  }
  0x2b   :  { %2505 = vset.pattern.permute.xlu1 %v2747_v4  ;;  %2504 = vset.pattern.permute.xlu0 %v2747_v4 }
  0x2c   :  { %v101_v27 = vand.u32 127, %v100_v24 }
  0x2e   :  { %v154_v41 = vadd.s32 128, %v101_v27 }
  0x30   :  { %v98_v1 = vld [vmem:[%s3526_s2 + $0x10] sm:$0xff]  ;;  %v96_v2 = vld [vmem:[%s3526_s2] sm:$0xff]  ;;  %v99_v3 = vld [vmem:[%s3526_s2 + $0x18] sm:$0xff] }
  0x31   :  { %v104_v5 = vmul.u32 16, %v98_v1  ;;  %v97_v6 = vld [vmem:[%s3526_s2 + $0x8] sm:$0xff]  ;;  %v102_v7 = vmul.u32 16, %v96_v2 }
  0x32   :  { %v105_v8 = vmul.u32 16, %v99_v3  ;;  %v103_v9 = vmul.u32 16, %v97_v6 }
  0x33   :  { %113 = vperm.xlu1 %2505, %v104_v5   ;;  %107 = vperm.xlu0 %2504, %v102_v7   ;;  %v122_v11 = vadd.s32 16, %v102_v7  ;;  %v124_v13 = vadd.s32 16, %v104_v5  ;;  %v156_v14 = vmul.u32 32, %v97_v6  ;;  %v155_v15 = vmul.u32 32, %v96_v2 }
  0x34   :  { %v123_v10 = vadd.s32 16, %v103_v9  ;;  %v125_v12 = vadd.s32 16, %v105_v8  ;;  %v158_v16 = vmul.u32 32, %v99_v3  ;;  %v157_v17 = vmul.u32 32, %v98_v1 }
  0x35   :  { %v180_v18 = vadd.s32 32, %v156_v14  ;;  %v179_v19 = vadd.s32 32, %v155_v15 }
  0x36   :  { %v182_v20 = vadd.s32 32, %v158_v16  ;;  %v181_v21 = vadd.s32 32, %v157_v17 }
  0x37   :  { %116 = vperm.xlu1 %2505, %v105_v8   ;;  %110 = vperm.xlu0 %2504, %v103_v9  }
  0x3b   :  { %130 = vperm.xlu1 %2505, %v123_v10   ;;  %127 = vperm.xlu0 %2504, %v122_v11  }
  0x3f   :  { %136 = vperm.xlu1 %2505, %v125_v12   ;;  %133 = vperm.xlu0 %2504, %v124_v13  }
  0x43   :  { %163 = vperm.xlu1 %2505, %v156_v14   ;;  %160 = vperm.xlu0 %2504, %v155_v15  }
  0x47   :  { %169 = vperm.xlu1 %2505, %v158_v16   ;;  %166 = vperm.xlu0 %2504, %v157_v17  }
  0x4b   :  { %187 = vperm.xlu1 %2505, %v180_v18   ;;  %184 = vperm.xlu0 %2504, %v179_v19  }
  0x4f   :  { %193 = vperm.xlu1 %2505, %v182_v20   ;;  %190 = vperm.xlu0 %2504, %v181_v21  }
  0xae   :  { %v114_v22 = vpop.permute.xlu1 %113  ;;  %v108_v23 = vpop.permute.xlu0 %107 }
  0xaf   :  { %vm118_vm2 = vcmp.ge.s32.totalorder %v101_v27, %v108_v23  ;;  %vm120_vm8 = vcmp.ge.s32.totalorder %v101_v27, %v114_v22 }
  0xb2   :  { %v117_v25 = vpop.permute.xlu1 %116  ;;  %v111_v26 = vpop.permute.xlu0 %110 }
  0xb3   :  { %vm119_vm0 = vcmp.ge.s32.totalorder %v101_v27, %v111_v26  ;;  %vm121_vm6 = vcmp.ge.s32.totalorder %v101_v27, %v117_v25 }
  0xb6   :  { %v131_v28 = vpop.permute.xlu1 %130  ;;  %v128_v29 = vpop.permute.xlu0 %127 }
  0xb7   :  { %vm139_vm1 = vcmp.lt.s32.totalorder %v101_v27, %v131_v28  ;;  %vm138_vm4 = vcmp.lt.s32.totalorder %v101_v27, %v128_v29 }
  0xb8   :  { %vm143_vm3 = vmand %vm119_vm0, %vm139_vm1 }
  0xb9   :  { %v2896_v31 = vsel %vm143_vm3, 1.0, %v2748_v30  ;;  %vm142_vm5 = vmand %vm118_vm2, %vm138_vm4 }
  0xba   :  { %v2899_v32 = vsel %vm142_vm5, 1.0, %v2748_v30  ;;  %v137_v33 = vpop.permute.xlu1 %136  ;;  %v134_v34 = vpop.permute.xlu0 %133 }
  0xbb   :  { %vm141_vm7 = vcmp.lt.s32.totalorder %v101_v27, %v137_v33  ;;  %vm140_vm10 = vcmp.lt.s32.totalorder %v101_v27, %v134_v34 }
  0xbc   :  { %vm145_vm9 = vmand %vm121_vm6, %vm141_vm7 }
  0xbd   :  { %v2902_v35 = vsel %vm145_vm9, 1.0, %v2748_v30  ;;  %vm144_vm11 = vmand %vm120_vm8, %vm140_vm10 }
  0xbe   :  { %v2905_v36 = vsel %vm144_vm11, 1.0, %v2748_v30  ;;  %v164_v37 = vpop.permute.xlu1 %163  ;;  %v161_v38 = vpop.permute.xlu0 %160 }
  0xbf   :  { %vm173_vm12 = vcmp.ge.s32.totalorder %v101_v27, %v164_v37  ;;  %vm174_vm15 = vcmp.ge.s32.totalorder %v154_v41, %v164_v37  ;;  %vm171_vm3 = vcmp.ge.s32.totalorder %v101_v27, %v161_v38  ;;  %vm172_vm5 = vcmp.ge.s32.totalorder %v154_v41, %v161_v38 }
  0xc2   :  { %v170_v39 = vpop.permute.xlu1 %169  ;;  %v167_v40 = vpop.permute.xlu0 %166 }
  0xc3   :  { %vm177_vm7 = vcmp.ge.s32.totalorder %v101_v27, %v170_v39  ;;  %vm178_vm11 = vcmp.ge.s32.totalorder %v154_v41, %v170_v39 }
  0xc6   :  { %v188_v42 = vpop.permute.xlu1 %187  ;;  %v185_v43 = vpop.permute.xlu0 %184 }
  0xc7   :  { %vm197_vm13 = vcmp.lt.s32.totalorder %v101_v27, %v188_v42  ;;  %vm198_vm14 = vcmp.lt.s32.totalorder %v154_v41, %v188_v42  ;;  %vm195_vm1 = vcmp.lt.s32.totalorder %v101_v27, %v185_v43  ;;  %vm196_vm2 = vcmp.lt.s32.totalorder %v154_v41, %v185_v43 }
  0xc8   :  { %vm205_vm0 = vmand %vm173_vm12, %vm197_vm13 }
  0xc9   :  { %vm206_vm4 = vmand %vm174_vm15, %vm198_vm14  ;;  %v2908_v44 = vsel %vm205_vm0, 1.0, %v2748_v30  ;;  %vm175_vm15 = vcmp.ge.s32.totalorder %v101_v27, %v167_v40 }
  0xca   :  { %v2911_v45 = vsel %vm206_vm4, 1.0, %v2748_v30  ;;  %vm203_vm6 = vmand %vm171_vm3, %vm195_vm1  ;;  %v194_v46 = vpop.permute.xlu1 %193  ;;  %v191_v48 = vpop.permute.xlu0 %190  ;;  %vm176_vm1 = vcmp.ge.s32.totalorder %v154_v41, %v167_v40 }
  0xcb   :  { %vm204_vm8 = vmand %vm172_vm5, %vm196_vm2  ;;  %v2914_v47 = vsel %vm203_vm6, 1.0, %v2748_v30  ;;  %vm201_vm9 = vcmp.lt.s32.totalorder %v101_v27, %v194_v46  ;;  %vm202_vm10 = vcmp.lt.s32.totalorder %v154_v41, %v194_v46  ;;  %vm199_vm13 = vcmp.lt.s32.totalorder %v101_v27, %v191_v48 }
  0xcc   :  { %v2917_v49 = vsel %vm204_vm8, 1.0, %v2748_v30  ;;  %vm209_vm12 = vmand %vm177_vm7, %vm201_vm9  ;;  %vm200_vm14 = vcmp.lt.s32.totalorder %v154_v41, %v191_v48 }
  0xcd   :  { %vm210_vm0 = vmand %vm178_vm11, %vm202_vm10  ;;  %v2920_v50 = vsel %vm209_vm12, 1.0, %v2748_v30 }
  0xce   :  { %v2923_v51 = vsel %vm210_vm0, 1.0, %v2748_v30  ;;  %vm207_vm2 = vmand %vm175_vm15, %vm199_vm13 }
  0xcf   :  { %vm208_vm3 = vmand %vm176_vm1, %vm200_vm14  ;;  %v2926_v52 = vsel %vm207_vm2, 1.0, %v2748_v30 }
  0xd0   :  { %v2929_v53 = vsel %vm208_vm3, 1.0, %v2748_v30 }
  0xd1 LB: > { %s233_s4 = sld [smem:[#allocation7 + %s2711_s0]]  ;;  %vm237_vm4 = vcmask 122880   ;;  %s236_s23 = scalar_lea.vmem [#allocation2], %s2711_s0  ;;  %s2711_s0 = sphi %s2709_s0, %s232_s0  }
  0xd2   : > { %s3527_s19 = sld [smem:[#allocation19_spill]]  ;;  %s232_s0 = sadd.s32 1, %s2711_s0  }
  0xd3   : > { %p229_p10 = scmp.ge.s32.totalorder %s232_s0, 32  }
  0xd4   :  { %s2749_s1 = smov (%p229_p10), 16   ;;  %vm336_vm5 = vcmask (%p229_p10), 261120   ;;  %s2750_s24 = smov (%p229_p10), 32   ;;  %vm331_vm6 = vcmask (%p229_p10), 130048   ;;  %vm341_vm7 = vcmask (%p229_p10), 392192   ;;  %vm346_vm8 = vcmask (%p229_p10), 523264  }
  0xd5   :  { %489 = vst.msk [vmem:[#allocation5] sm:$0xff] (%p229_p10), %vm336_vm5, %v2748_v30  ;;  %490 = vst.msk [vmem:[#allocation5 + $0x8] sm:$0xff] (%p229_p10), %vm336_vm5, %v2748_v30  ;;  %s3528_s26 = sld [smem:[#allocation20_spill]] (%p229_p10)  ;;  %s2751_s28 = smov (%p229_p10), 48   ;;  %vm351_vm9 = vcmask (%p229_p10), 654336   ;;  %vm356_vm10 = vcmask (%p229_p10), 785408  }
  0xd6   :  { %231 = sbr.rel (!%p229_p10) target bundleno = 209 (0xd1), region = 199  ;;  %s2752_s5 = smov (%p229_p10), 64   ;;  %vm361_vm11 = vcmask (%p229_p10), 916480  }
  0xd7   :  { %s2753_s2 = smov (%p229_p10), 80   ;;  %s2754_s29 = smov (%p229_p10), 96  }
  0xd8   : > { %s234_s22 = scalar_lea.vmem %s3527_s19, %s233_s4  ;;  %s2755_s0 = smov (%p229_p10), 112  }
  0xd9   : > { %v235_v54 = vld [vmem:[%s234_s22] sm:$0x1] }
  0xda   : > { %238 = vst.msk [vmem:[%s236_s23] sm:$0x1] %vm237_vm4, %v235_v54 }
  0xdb   :  { %v2506_v59 = vld [vmem:[%s3528_s26 + $0x38] sm:$0xff]   ;;  %v2507_v60 = vld [vmem:[%s3528_s26 + $0x30] sm:$0xff]   ;;  %v2508_v61 = vld [vmem:[%s3528_s26 + $0x28] sm:$0xff]  }
  0xdc   :  { %2337 = vmatprep.subr.bf16.mxu0 %v2506_v59  ;;  %v2509_v62 = vld [vmem:[%s3528_s26 + $0x20] sm:$0xff]   ;;  %v2510_v63 = vld [vmem:[%s3528_s26 + $0x18] sm:$0xff]   ;;  %v2511_v0 = vld [vmem:[%s3528_s26 + $0x10] sm:$0xff]  }
  0xdd   :  { %2338 = vmatpush3.bf16.msra.mxu0 %v2506_v59  ;;  %v2512_v1 = vld [vmem:[%s3528_s26 + $0x8] sm:$0xff]   ;;  %v2513_v2 = vld [vmem:[%s3528_s26] sm:$0xff]   ;;  %s2713_s26 = smov 0  }
  0xde   :  { %2339 = vmatprep.subr.bf16.mxu0 %v2507_v60 }
  0xe1   :  { %v2934_v55 = vld [vmem:[#allocation2 + $0x10] sm:$0xff]  ;;  %v2936_v56 = vld [vmem:[#allocation2] sm:$0xff]  ;;  %v2940_v57 = vld [vmem:[#allocation2 + $0x18] sm:$0xff]  ;;  %2340 = vmatpush3.bf16.msra.mxu0 %v2507_v60 }
  0xe2   :  { %251 = vrot.lane.b32.xlu1 %v2934_v55, %s2749_s1  ;;  %247 = vrot.lane.b32.xlu0 %v2936_v56, %s2749_s1  ;;  %v2942_v58 = vld [vmem:[#allocation2 + $0x8] sm:$0xff] }
  0xe3   :  { %2341 = vmatprep.subr.bf16.mxu0 %v2508_v61 }
  0xe5   :  { %2342 = vmatpush3.bf16.msra.mxu0 %v2508_v61 }
  0xe6   :  { %253 = vrot.lane.b32.xlu1 %v2940_v57, %s2749_s1  ;;  %249 = vrot.lane.b32.xlu0 %v2942_v58, %s2749_s1 }
  0xe7   :  { %2343 = vmatprep.subr.bf16.mxu0 %v2509_v62 }
  0xe9   :  { %2344 = vmatpush3.bf16.msra.mxu0 %v2509_v62 }
  0xea   :  { %261 = vrot.lane.b32.xlu1 %v2942_v58, %s2750_s24  ;;  %259 = vrot.lane.b32.xlu0 %v2936_v56, %s2750_s24 }
  0xeb   :  { %2345 = vmatprep.subr.bf16.mxu0 %v2510_v63 }
  0xed   :  { %2346 = vmatpush3.bf16.msra.mxu0 %v2510_v63 }
  0xee   :  { %265 = vrot.lane.b32.xlu1 %v2940_v57, %s2750_s24  ;;  %263 = vrot.lane.b32.xlu0 %v2934_v55, %s2750_s24 }
  0xef   :  { %2347 = vmatprep.subr.bf16.mxu0 %v2511_v0 }
  0xf1   :  { %2348 = vmatpush3.bf16.msra.mxu0 %v2511_v0 }
  0xf2   :  { %273 = vrot.lane.b32.xlu1 %v2942_v58, %s2751_s28  ;;  %271 = vrot.lane.b32.xlu0 %v2936_v56, %s2751_s28 }
  0xf3   :  { %2349 = vmatprep.subr.bf16.mxu0 %v2512_v1 }
  0xf5   :  { %2350 = vmatpush3.bf16.msra.mxu0 %v2512_v1 }
  0xf6   :  { %277 = vrot.lane.b32.xlu1 %v2940_v57, %s2751_s28  ;;  %275 = vrot.lane.b32.xlu0 %v2934_v55, %s2751_s28 }
  0xf7   :  { %2351 = vmatprep.subr.bf16.mxu0 %v2513_v2 }
  0xf9   :  { %2352 = vmatpush3.bf16.msra.mxu0 %v2513_v2 }
  0xfa   :  { %285 = vrot.lane.b32.xlu1 %v2942_v58, %s2752_s5  ;;  %283 = vrot.lane.b32.xlu0 %v2936_v56, %s2752_s5 }
  0xfe   :  { %289 = vrot.lane.b32.xlu1 %v2940_v57, %s2752_s5  ;;  %287 = vrot.lane.b32.xlu0 %v2934_v55, %s2752_s5 }
 0x102   :  { %297 = vrot.lane.b32.xlu1 %v2942_v58, %s2753_s2  ;;  %295 = vrot.lane.b32.xlu0 %v2936_v56, %s2753_s2 }
 0x106   :  { %301 = vrot.lane.b32.xlu1 %v2940_v57, %s2753_s2  ;;  %299 = vrot.lane.b32.xlu0 %v2934_v55, %s2753_s2 }
 0x10a   :  { %309 = vrot.lane.b32.xlu1 %v2942_v58, %s2754_s29  ;;  %307 = vrot.lane.b32.xlu0 %v2936_v56, %s2754_s29 }
 0x10e   :  { %313 = vrot.lane.b32.xlu1 %v2940_v57, %s2754_s29  ;;  %311 = vrot.lane.b32.xlu0 %v2934_v55, %s2754_s29 }
 0x112   :  { %321 = vrot.lane.b32.xlu1 %v2942_v58, %s2755_s0  ;;  %319 = vrot.lane.b32.xlu0 %v2936_v56, %s2755_s0 }
 0x116   :  { %325 = vrot.lane.b32.xlu1 %v2940_v57, %s2755_s0  ;;  %323 = vrot.lane.b32.xlu0 %v2934_v55, %s2755_s0 }
 0x154   :  { %v252_v3 = vpop.permute.xlu1 %251  ;;  %v248_v5 = vpop.permute.xlu0 %247 }
 0x155   :  { %v332_v26 = vsel %vm331_vm6, %v2936_v56, %v248_v5  ;;  %v334_v41 = vsel %vm331_vm6, %v2934_v55, %v252_v3 }
 0x158   :  { %v254_v6 = vpop.permute.xlu1 %253  ;;  %v250_v7 = vpop.permute.xlu0 %249 }
 0x159   :  { %v333_v27 = vsel %vm331_vm6, %v2942_v58, %v250_v7  ;;  %v335_v42 = vsel %vm331_vm6, %v2940_v57, %v254_v6 }
 0x15c   :  { %v262_v8 = vpop.permute.xlu1 %261  ;;  %v260_v9 = vpop.permute.xlu0 %259 }
 0x15d   :  { %v338_v28 = vsel %vm336_vm5, %v333_v27, %v262_v8  ;;  %v337_v29 = vsel %vm336_vm5, %v332_v26, %v260_v9 }
 0x160   :  { %v266_v10 = vpop.permute.xlu1 %265  ;;  %v264_v11 = vpop.permute.xlu0 %263 }
 0x161   :  { %v340_v48 = vsel %vm336_vm5, %v335_v42, %v266_v10  ;;  %v339_v54 = vsel %vm336_vm5, %v334_v41, %v264_v11 }
 0x164   :  { %v274_v12 = vpop.permute.xlu1 %273  ;;  %v272_v13 = vpop.permute.xlu0 %271 }
 0x165   :  { %v343_v37 = vsel %vm341_vm7, %v338_v28, %v274_v12  ;;  %v342_v38 = vsel %vm341_vm7, %v337_v29, %v272_v13 }
 0x168   :  { %v278_v14 = vpop.permute.xlu1 %277  ;;  %v276_v15 = vpop.permute.xlu0 %275 }
 0x169   :  { %v345_v61 = vsel %vm341_vm7, %v340_v48, %v278_v14  ;;  %v344_v55 = vsel %vm341_vm7, %v339_v54, %v276_v15 }
 0x16c   :  { %v286_v16 = vpop.permute.xlu1 %285  ;;  %v284_v17 = vpop.permute.xlu0 %283 }
 0x16d   :  { %v348_v39 = vsel %vm346_vm8, %v343_v37, %v286_v16  ;;  %v347_v40 = vsel %vm346_vm8, %v342_v38, %v284_v17 }
 0x170   :  { %v290_v18 = vpop.permute.xlu1 %289  ;;  %v288_v19 = vpop.permute.xlu0 %287 }
 0x171   :  { %v350_v63 = vsel %vm346_vm8, %v345_v61, %v290_v18  ;;  %v349_v0 = vsel %vm346_vm8, %v344_v55, %v288_v19 }
 0x174   :  { %v298_v20 = vpop.permute.xlu1 %297  ;;  %v296_v21 = vpop.permute.xlu0 %295 }
 0x175   :  { %v353_v43 = vsel %vm351_vm9, %v348_v39, %v298_v20  ;;  %v352_v46 = vsel %vm351_vm9, %v347_v40, %v296_v21 }
 0x178   :  { %v302_v22 = vpop.permute.xlu1 %301  ;;  %v300_v23 = vpop.permute.xlu0 %299 }
 0x179   :  { %v355_v3 = vsel %vm351_vm9, %v350_v63, %v302_v22  ;;  %v354_v5 = vsel %vm351_vm9, %v349_v0, %v300_v23 }
 0x17c   :  { %v310_v24 = vpop.permute.xlu1 %309  ;;  %v308_v25 = vpop.permute.xlu0 %307 }
 0x17d   :  { %v358_v56 = vsel %vm356_vm10, %v353_v43, %v310_v24  ;;  %v357_v58 = vsel %vm356_vm10, %v352_v46, %v308_v25 }
 0x180   :  { %v314_v33 = vpop.permute.xlu1 %313  ;;  %v312_v34 = vpop.permute.xlu0 %311 }
 0x181   :  { %v360_v6 = vsel %vm356_vm10, %v355_v3, %v314_v33  ;;  %v359_v7 = vsel %vm356_vm10, %v354_v5, %v312_v34 }
 0x184   :  { %v322_v59 = vpop.permute.xlu1 %321  ;;  %v320_v60 = vpop.permute.xlu0 %319 }
 0x185   :  { %v363_v57 = vsel %vm361_vm11, %v358_v56, %v322_v59  ;;  %v362_v62 = vsel %vm361_vm11, %v357_v58, %v320_v60 }
 0x186   :  { %v366_v1 = vmul.f32 %v2899_v32, %v362_v62  ;;  %v367_v2 = vmul.f32 %v2896_v31, %v363_v57 }
 0x188   :  { %v326_v8 = vpop.permute.xlu1 %325  ;;  %v324_v9 = vpop.permute.xlu0 %323  ;;  %v370_v10 = vpack.c.bf16 %v367_v2, %v366_v1 }
 0x189   :  { %v365_v11 = vsel %vm361_vm11, %v360_v6, %v326_v8  ;;  %v364_v12 = vsel %vm361_vm11, %v359_v7, %v324_v9 }
 0x18a   :  { %v369_v13 = vmul.f32 %v2902_v35, %v365_v11  ;;  %v368_v32 = vmul.f32 %v2905_v36, %v364_v12  ;;  %2353 = vmatprep.mubr.bf16.mxu0 %v370_v10 }
 0x18c   :  { %v371_v31 = vpack.c.bf16 %v369_v13, %v368_v32 }
 0x18e   :  { %2354 = vmatmul.mubr.bf16.vlgmr.msra.gmra.mxu0 %v371_v31 }
 0x24e   :  { %v2355_v14 = vpop.f32.mrf.mxu0 }
 0x24f   :  { %487 = vst.msk [vmem:[#allocation4 + $0x10] sm:$0xff] %vm336_vm5, %v2355_v14 }
 0x250   :  { %v470_v15 = vpop.f32.mrf.mxu0 }
 0x251   :  { %485 = vst.msk [vmem:[#allocation4] sm:$0xff] %vm336_vm5, %v470_v15 }
 0x252   :  { %v2356_v16 = vpop.f32.mrf.mxu0 }
 0x253   :  { %488 = vst.msk [vmem:[#allocation4 + $0x18] sm:$0xff] %vm336_vm5, %v2356_v16 }
 0x254   :  { %v473_v17 = vpop.f32.mrf.mxu0 }
 0x255   :  { %486 = vst.msk [vmem:[#allocation4 + $0x8] sm:$0xff] %vm336_vm5, %v473_v17 }
 0x256 LB: > { %s497_s4 = sld [smem:[#allocation10 + %s2715_s26]]  ;;  %s500_s30 = scalar_lea.vmem [#allocation4], %s2715_s26  ;;  %vm503_vm12 = vcmask 253952   ;;  %s2715_s26 = sphi %s2713_s26, %s496_s26  }
 0x257   : > { %s496_s26 = sadd.s32 1, %s2715_s26  }
 0x258   : > { %p493_p11 = scmp.ge.s32.totalorder %s496_s26, 32  }
 0x259   :  { %2357 = vmatprep.subr.bf16.mxu1 (%p493_p11), %v2748_v30  ;;  %s3529_s1 = sld [smem:[#allocation21_spill]] (%p493_p11)  ;;  %vm2756_vm13 = vmmov (%p493_p11), 0   ;;  %v2143_v24 = vld [vmem:[%s3499_s6] ss:$0 sm:$0xff] (%p493_p11) }
 0x25a   :  { %2359 = vmatprep.mubr.msk.bf16.mxu1 (%p493_p11), %vm2756_vm13, %v2748_v30  ;;  %s3530_s27 = sld [smem:[#allocation19_spill]] (%p493_p11) }
 0x25c   : > { %v501_v35 = vld [vmem:[%s500_s30] sm:$0x1]  ;;  %s498_s19 = scalar_lea.vmem [#allocation5], %s497_s4  ;;  %495 = sbr.rel (!%p493_p11) target bundleno = 598 (0x256), region = 210 }
 0x25d   : > { %v499_v36 = vld [vmem:[%s498_s19] sm:$0x1]  ;;  %s2717_s4 = smov (%p493_p11), 0  }
 0x25e   : > { %v502_v18 = vadd.f32 %v501_v35, %v499_v36 }
 0x25f   :  { %v2514_v19 = vld [vmem:[%s3529_s1] sm:$0xff] (%p493_p11)  }
 0x260   : > { %504 = vst.msk [vmem:[%s498_s19] sm:$0x1] %vm503_vm12, %v502_v18  ;;  %v505_v20 = vld [vmem:[%s3530_s27] sm:$0xff] (%p493_p11)  ;;  %v506_v21 = vld [vmem:[%s3530_s27 + $0x8] sm:$0xff] (%p493_p11)  ;;  %2358 = vmatpush3.bf16.msra.mxu1 (%p493_p11), %v2514_v19 }
 0x261   :  { %v518_v22 = vpack.c.bf16 %v506_v21, %v505_v20 }
 0x263   :  { %2360 = vmatmul.mubr.msk.bf16.vlgmr.msra.gmra.mxu1 %vm331_vm6, %v518_v22 }
 0x267   :  { %v507_v23 = vld [vmem:[#allocation5] sm:$0xff]  ;;  %v508_v26 = vld [vmem:[#allocation5 + $0x8] sm:$0xff] }
 0x268   :  { %v516_v25 = vadd.f32 %v2143_v24, %v507_v23  ;;  %v517_v29 = vadd.f32 %v2143_v24, %v508_v26 }
 0x323   :  { %v564_v27 = vpop.f32.mrf.mxu1 }
 0x324   :  { %v571_v28 = vadd.f32 %v564_v27, %v516_v25 }
 0x325   :  { %v2361_v33 = vpop.f32.mrf.mxu1 }
 0x326   :  { %2515 = vtanh.f32 %v571_v28 }
 0x327   :  { %v567_v34 = vpop.f32.mrf.mxu1 }
 0x328   :  { %v572_v37 = vadd.f32 %v567_v34, %v517_v29 }
 0x329   :  { %v2362_v38 = vpop.f32.mrf.mxu1 }
 0x32a   :  { %2517 = vtanh.f32 %v572_v37 }
 0x333   :  { %v2516_v39 = vpop.eup %2515 }
 0x334   :  { %575 = vst.msk [vmem:[#allocation12] sm:$0xff] %vm336_vm5, %v2516_v39 }
 0x337   :  { %v2518_v40 = vpop.eup %2517 }
 0x338   :  { %576 = vst.msk [vmem:[#allocation12 + $0x8] sm:$0xff] %vm336_vm5, %v2518_v40 }
 0x339 LB: > { %s583_s6 = sld [smem:[#allocation7 + %s2719_s4]]  ;;  %s587_s22 = scalar_lea.vmem [#allocation2], %s2719_s4  ;;  %s2719_s4 = sphi %s2717_s4, %s582_s4  }
 0x33a   : > { %s584_s30 = sld [smem:[#allocation10 + %s2719_s4]]  ;;  %s592_s1 = scalar_lea.vmem [#allocation3], %s2719_s4 }
 0x33b   : > { %s582_s4 = sadd.s32 1, %s2719_s4  }
 0x33c   : > { %p579_p12 = scmp.ge.s32.totalorder %s582_s4, 32  }
 0x33d   :  { %v2529_v58 = vld [vmem:[%s3509_s16 + $0x18] sm:$0xff] (%p579_p12)   ;;  %v2530_v60 = vld [vmem:[%s3509_s16 + $0x10] sm:$0xff] (%p579_p12)   ;;  %v2531_v61 = vld [vmem:[%s3509_s16 + $0x8] sm:$0xff] (%p579_p12)   ;;  %vm842_vm14 = vcmask (%p579_p12), 7168  }
 0x33e   :  { %581 = sbr.rel (!%p579_p12) target bundleno = 825 (0x339), region = 221  ;;  %2363 = vmatprep.subr.bf16.mxu0 (%p579_p12), %v2529_v58  ;;  %v2533_v55 = vld [vmem:[%s3511_s18 + $0x18] sm:$0xff] (%p579_p12)   ;;  %v2532_v57 = vld [vmem:[%s3509_s16] sm:$0xff] (%p579_p12)   ;;  %v2534_v31 = vld [vmem:[%s3511_s18 + $0x10] sm:$0xff] (%p579_p12)  }
 0x33f   : > { %s585_s19 = scalar_lea.vmem [#allocation12], %s583_s6  ;;  %2364 = vmatpush3.bf16.msra.mxu0 (%p579_p12), %v2529_v58  ;;  %2375 = vmatprep.subr.bf16.mxu1 (%p579_p12), %v2533_v55  ;;  %v2535_v14 = vld [vmem:[%s3511_s18 + $0x8] sm:$0xff] (%p579_p12)   ;;  %v2536_v15 = vld [vmem:[%s3511_s18] sm:$0xff] (%p579_p12)   ;;  %v2153_v29 = vld [vmem:[#allocation6] ss:$0 sm:$0xff] (%p579_p12) }
 0x340   : > { %v586_v41 = vld [vmem:[%s585_s19] sm:$0x1]  ;;  %s590_s23 = scalar_lea.vmem [#allocation12], %s584_s30  ;;  %2365 = vmatprep.subr.bf16.mxu0 (%p579_p12), %v2530_v60  ;;  %2376 = vmatpush3.bf16.msra.mxu1 (%p579_p12), %v2533_v55  ;;  %s2721_s19 = smov (%p579_p12), 0  }
 0x341   : > { %589 = vst.msk [vmem:[%s587_s22] sm:$0x1] %vm503_vm12, %v586_v41  ;;  %v591_v42 = vld [vmem:[%s590_s23] sm:$0x1]  ;;  %2377 = vmatprep.subr.bf16.mxu1 (%p579_p12), %v2534_v31 }
 0x342   : > { %593 = vst.msk [vmem:[%s592_s1] sm:$0x1] %vm503_vm12, %v591_v42  ;;  %v2146_v35 = vld [vmem:[%s3510_s17] ss:$0 sm:$0xff] (%p579_p12) }
 0x343   :  { %2366 = vmatpush3.bf16.msra.mxu0 %v2530_v60 }
 0x344   :  { %2367 = vmatprep.subr.bf16.mxu0 %v2531_v61  ;;  %2378 = vmatpush3.bf16.msra.mxu1 %v2534_v31 }
 0x345   :  { %2379 = vmatprep.subr.bf16.mxu1 %v2535_v14 }
 0x347   :  { %2368 = vmatpush3.bf16.msra.mxu0 %v2531_v61 }
 0x348   :  { %2369 = vmatprep.subr.bf16.mxu0 %v2532_v57  ;;  %v594_v63 = vld [vmem:[#allocation2] sm:$0xff]  ;;  %v595_v0 = vld [vmem:[#allocation2 + $0x8] sm:$0xff]  ;;  %v596_v7 = vld [vmem:[#allocation2 + $0x10] sm:$0xff]  ;;  %2380 = vmatpush3.bf16.msra.mxu1 %v2535_v14 }
 0x349   :  { %v598_v43 = vld [vmem:[#allocation3] sm:$0xff]  ;;  %v599_v46 = vld [vmem:[#allocation3 + $0x8] sm:$0xff]  ;;  %v600_v48 = vld [vmem:[#allocation3 + $0x10] sm:$0xff]  ;;  %2381 = vmatprep.subr.bf16.mxu1 %v2536_v15 }
 0x34a   :  { %v2519_v54 = vpack.i.bf16 %v599_v46, %v598_v43  ;;  %v601_v56 = vld [vmem:[#allocation3 + $0x18] sm:$0xff] }
 0x34b   :  { %v2524_v59 = vpack.i.bf16 %v601_v56, %v600_v48  ;;  %2370 = vmatpush3.bf16.msra.mxu0 %v2532_v57  ;;  %v597_v8 = vld [vmem:[#allocation2 + $0x18] sm:$0xff] }
 0x34c   :  { %2520 = vrot.lane.b32.xlu0 %v2519_v54, %s2750_s24  ;;  %2382 = vmatpush3.bf16.msra.mxu1 %v2536_v15 }
 0x350   :  { %2525 = vrot.lane.b32.xlu0 %v2524_v59, %s2750_s24 }
 0x3be   :  { %v2521_v62 = vpop.permute.xlu0 %2520 }
 0x3bf   :  { %v2523_v1 = vunpack.i.h.bf16 %v2521_v62  ;;  %v2522_v2 = vunpack.i.l.bf16 %v2521_v62 }
 0x3c1   :  { %v618_v3 = vsel %vm336_vm5, %v594_v63, %v2522_v2  ;;  %v619_v5 = vsel %vm336_vm5, %v595_v0, %v2523_v1 }
 0x3c2   :  { %v2526_v6 = vpop.permute.xlu0 %2525  ;;  %v622_v9 = vpack.c.bf16 %v619_v5, %v618_v3 }
 0x3c3   :  { %v2528_v10 = vunpack.i.h.bf16 %v2526_v6  ;;  %v2527_v11 = vunpack.i.l.bf16 %v2526_v6 }
 0x3c4   :  { %2371 = vmatprep.mubr.msk.bf16.mxu0 %vm346_vm8, %v622_v9 }
 0x3c5   :  { %v620_v12 = vsel %vm336_vm5, %v596_v7, %v2527_v11  ;;  %v621_v13 = vsel %vm336_vm5, %v597_v8, %v2528_v10 }
 0x3c6   :  { %v623_v32 = vpack.c.bf16 %v621_v13, %v620_v12 }
 0x3c8   :  { %2372 = vmatmul.mubr.msk.bf16.vlgmr.msra.gmra.mxu0 %vm346_vm8, %v623_v32 }
 0x488   :  { %v2373_v16 = vpop.f32.mrf.mxu0 }
 0x489   :  { %v712_v20 = vadd.f32 %v2373_v16, %v2146_v35 }
 0x48a   :  { %v703_v17 = vpop.f32.mrf.mxu0 }
 0x48b   :  { %v704_v18 = vadd.f32 %v2146_v35, %v703_v17  ;;  %v720_v26 = vmax.f32 %v712_v20, 0.0 }
 0x48c   :  { %v2374_v36 = vpop.f32.mrf.mxu0 }
 0x48d   :  { %v715_v19 = vadd.f32 %v2374_v36, %v2146_v35  ;;  %v718_v24 = vmax.f32 %v704_v18, 0.0 }
 0x48e   :  { %v706_v21 = vpop.f32.mrf.mxu0 }
 0x48f   :  { %v707_v22 = vadd.f32 %v2146_v35, %v706_v21  ;;  %v721_v23 = vmax.f32 %v715_v19, 0.0 }
 0x491   :  { %v719_v25 = vmax.f32 %v707_v22, 0.0  ;;  %v723_v28 = vpack.c.bf16 %v721_v23, %v720_v26 }
 0x493   :  { %v722_v27 = vpack.c.bf16 %v719_v25, %v718_v24 }
 0x495   :  { %2383 = vmatprep.mubr.msk.bf16.mxu1 %vm346_vm8, %v722_v27 }
 0x496   :  { %2384 = vmatmul.mubr.msk.bf16.vlgmr.msra.gmra.mxu1 %vm346_vm8, %v723_v28 }
 0x556   :  { %v2385_v33 = vpop.f32.mrf.mxu1 }
 0x557   :  { %v812_v34 = vadd.f32 %v2385_v33, %v2153_v29 }
 0x558   :  { %v803_v37 = vpop.f32.mrf.mxu1 }
 0x559   :  { %v820_v38 = vsub.f32 0.0, %v812_v34  ;;  %v804_v39 = vadd.f32 %v2153_v29, %v803_v37 }
 0x55a   :  { %v2386_v40 = vpop.f32.mrf.mxu1 }
 0x55b   :  { %v826_v41 = vmul.f32 1.442695, %v820_v38  ;;  %v818_v42 = vsub.f32 0.0, %v804_v39  ;;  %v815_v43 = vadd.f32 %v2386_v40, %v2153_v29 }
 0x55c   :  { %v806_v46 = vpop.f32.mrf.mxu1 }
 0x55d   :  { %2537 = vpow2.f32 %v826_v41  ;;  %v822_v48 = vmul.f32 1.442695, %v818_v42  ;;  %v821_v54 = vsub.f32 0.0, %v815_v43  ;;  %v807_v56 = vadd.f32 %v2153_v29, %v806_v46 }
 0x55f   :  { %2539 = vpow2.f32 %v822_v48  ;;  %v828_v58 = vmul.f32 1.442695, %v821_v54  ;;  %v819_v59 = vsub.f32 0.0, %v807_v56 }
 0x561   :  { %2541 = vpow2.f32 %v828_v58  ;;  %v824_v60 = vmul.f32 1.442695, %v819_v59 }
 0x563   :  { %2543 = vpow2.f32 %v824_v60 }
 0x56a   :  { %v2538_v61 = vpop.eup %2537 }
 0x56b   :  { %v832_v55 = vadd.f32 1.0, %v2538_v61 }
 0x56c   :  { %v2540_v57 = vpop.eup %2539 }
 0x56d   :  { %v830_v62 = vadd.f32 1.0, %v2540_v57  ;;  %2545 = vrcp.f32 %v832_v55 }
 0x56e   :  { %v2542_v63 = vpop.eup %2541 }
 0x56f   :  { %v833_v0 = vadd.f32 1.0, %v2542_v63  ;;  %2547 = vrcp.f32 %v830_v62 }
 0x570   :  { %v2544_v1 = vpop.eup %2543 }
 0x571   :  { %2549 = vrcp.f32 %v833_v0  ;;  %v831_v2 = vadd.f32 1.0, %v2544_v1 }
 0x573   :  { %2551 = vrcp.f32 %v831_v2 }
 0x57a   :  { %v2546_v3 = vpop.eup %2545 }
 0x57b   :  { %v845_v11 = vsel %vm842_vm14, %v2546_v3, inf  ;;  %v862_v17 = vsel %vm842_vm14, %v2546_v3, -inf }
 0x57c   :  { %v2548_v5 = vpop.eup %2547 }
 0x57d   :  { %v843_v9 = vsel %vm842_vm14, %v2548_v5, inf  ;;  %v860_v31 = vsel %vm842_vm14, %v2548_v5, -inf }
 0x57e   :  { %v2550_v6 = vpop.eup %2549 }
 0x57f   :  { %v846_v7 = vsel %vm842_vm14, %v2550_v6, inf  ;;  %v863_v14 = vsel %vm842_vm14, %v2550_v6, -inf }
 0x580   :  { %v2552_v8 = vpop.eup %2551  ;;  %v848_v32 = vmin.f32 %v845_v11, %v846_v7  ;;  %v865_v35 = vmax.f32 %v862_v17, %v863_v14 }
 0x581   :  { %v844_v10 = vsel %vm842_vm14, %v2552_v8, inf  ;;  %v861_v12 = vsel %vm842_vm14, %v2552_v8, -inf }
 0x582   :  { %v847_v13 = vmin.f32 %v843_v9, %v844_v10  ;;  %v864_v16 = vmax.f32 %v860_v31, %v861_v12 }
 0x584   :  { %v849_v15 = vmin.f32 %v847_v13, %v848_v32  ;;  %v866_v36 = vmax.f32 %v864_v16, %v865_v35 }
 0x586   :  { %850 = vmin.xlane.f32.xlu1 %v849_v15 }
 0x58a   :  { %867 = vmax.xlane.f32.xlu1 %v866_v36 }
 0x60f   :  { %v851_v18 = vpop.xlane.xlu1 %850 }
 0x610   :  { %v852_v19 = vrot.slane %v851_v18, 4 }
 0x612   :  { %v853_v20 = vmin.f32 %v851_v18, %v852_v19 }
 0x613   :  { %v868_v21 = vpop.xlane.xlu1 %867 }
 0x614   :  { %v854_v22 = vrot.slane %v853_v20, 2  ;;  %v869_v23 = vrot.slane %v868_v21, 4 }
 0x616   :  { %v870_v24 = vmax.f32 %v868_v21, %v869_v23  ;;  %v855_v25 = vmin.f32 %v853_v20, %v854_v22 }
 0x618   :  { %v871_v26 = vrot.slane %v870_v24, 2  ;;  %v856_v27 = vrot.slane %v855_v25, 1 }
 0x61a   :  { %v872_v28 = vmax.f32 %v870_v24, %v871_v26  ;;  %v857_v29 = vmin.f32 %v855_v25, %v856_v27 }
 0x61c   :  { %2411 = vpush %v857_v29  ;;  %v873_v33 = vrot.slane %v872_v28, 1 }
 0x61e   :  { %v874_v34 = vmax.f32 %v872_v28, %v873_v33 }
 0x620   :  { %2413 = vpush %v874_v34 }
 0x64d   :  { %s2412_s17 = spop %2411 }
 0x64e   :  { %v859_v37 = vstv %s2412_s17 }
 0x64f   :  { %v877_v41 = vsub.f32 %v2548_v5, %v859_v37  ;;  %v878_v42 = vsub.f32 %v2552_v8, %v859_v37  ;;  %v879_v43 = vsub.f32 %v2546_v3, %v859_v37  ;;  %v880_v46 = vsub.f32 %v2550_v6, %v859_v37 }
 0x651   :  { %s2414_s18 = spop %2413 }
 0x652   :  { %v876_v38 = vstv %s2414_s18 }
 0x653   :  { %v881_v39 = vsub.f32 %v876_v38, %v859_v37 }
 0x655   :  { %v882_v40 = vadd.f32 1e-08, %v881_v39 }
 0x657   :  { %2553 = vrcp.f32 %v882_v40 }
 0x664   :  { %v2554_v48 = vpop.eup %2553 }
 0x665   :  { %v3116_v54 = vmul.f32 %v2554_v48, %v877_v41  ;;  %v3118_v56 = vmul.f32 %v2554_v48, %v878_v42  ;;  %v3120_v58 = vmul.f32 %v2554_v48, %v879_v43  ;;  %v3122_v59 = vmul.f32 %v2554_v48, %v880_v46 }
 0x667   :  { %888 = vst.msk [vmem:[%s3514_s21] sm:$0xff] %vm842_vm14, %v3116_v54  ;;  %889 = vst.msk [vmem:[%s3514_s21 + $0x8] sm:$0xff] %vm842_vm14, %v3118_v56 }
 0x668   :  { %890 = vst.msk [vmem:[%s3514_s21 + $0x10] sm:$0xff] %vm842_vm14, %v3120_v58  ;;  %891 = vst.msk [vmem:[%s3514_s21 + $0x18] sm:$0xff] %vm842_vm14, %v3122_v59 }
 0x669 LB: > { %s898_s22 = sld [smem:[#allocation7 + %s2723_s19]]  ;;  %s901_s1 = scalar_lea.vmem [#allocation2], %s2723_s19  ;;  %s2723_s19 = sphi %s2721_s19, %s897_s19  }
 0x66a   : > { %s897_s19 = sadd.s32 1, %s2723_s19  }
 0x66b   : > { %p894_p13 = scmp.ge.s32.totalorder %s897_s19, 32  }
 0x66c   :  { %2555 = vset.pattern.permute.xlu0 (%p894_p13), %v2747_v4  ;;  %2556 = vset.pattern.permute.xlu1 (%p894_p13), %v2747_v4  ;;  %1177 = vst.msk [vmem:[#allocation5] sm:$0xff] (%p894_p13), %vm336_vm5, %v2748_v30  ;;  %1178 = vst.msk [vmem:[#allocation5 + $0x8] sm:$0xff] (%p894_p13), %vm336_vm5, %v2748_v30  ;;  %v2557_v57 = vld [vmem:[%s3500_s7 + $0x78] sm:$0xff] (%p894_p13)   ;;  %v2559_v4 = vld [vmem:[%s3500_s7 + $0x70] sm:$0xff] (%p894_p13)  }
 0x66d   :  { %896 = sbr.rel (!%p894_p13) target bundleno = 1641 (0x669), region = 232  ;;  %v2558_v62 = vld [vmem:[%s3500_s7 + $0x38] sm:$0xff] (%p894_p13)   ;;  %2244 = vmatprep.subr.bf16.mxu0 (%p894_p13), %v2557_v57  ;;  %v2560_v63 = vld [vmem:[%s3500_s7 + $0x30] sm:$0xff] (%p894_p13)   ;;  %v2561_v0 = vld [vmem:[%s3500_s7 + $0x68] sm:$0xff] (%p894_p13)  }
 0x66e   :  { %2245 = vmatpush3.bf16.msra.mxu0 (%p894_p13), %v2558_v62  ;;  %v2562_v3 = vld [vmem:[%s3500_s7 + $0x28] sm:$0xff] (%p894_p13)   ;;  %v2563_v5 = vld [vmem:[%s3500_s7 + $0x60] sm:$0xff] (%p894_p13)   ;;  %v2565_v7 = vld [vmem:[%s3500_s7 + $0x58] sm:$0xff] (%p894_p13)  }
 0x66f   : > { %s899_s23 = scalar_lea.vmem [#allocation12], %s898_s22  ;;  %2246 = vmatprep.subr.bf16.mxu0 (%p894_p13), %v2559_v4  ;;  %v2564_v6 = vld [vmem:[%s3500_s7 + $0x20] sm:$0xff] (%p894_p13)   ;;  %v2566_v8 = vld [vmem:[%s3500_s7 + $0x18] sm:$0xff] (%p894_p13)   ;;  %v2567_v9 = vld [vmem:[%s3500_s7 + $0x50] sm:$0xff] (%p894_p13)  }
 0x670   : > { %v900_v60 = vld [vmem:[%s899_s23] sm:$0x1]  ;;  %v2568_v10 = vld [vmem:[%s3500_s7 + $0x10] sm:$0xff] (%p894_p13)   ;;  %v2569_v11 = vld [vmem:[%s3500_s7 + $0x48] sm:$0xff] (%p894_p13)  }
 0x671   : > { %903 = vst.msk [vmem:[%s901_s1] sm:$0x1] %vm503_vm12, %v900_v60  ;;  %v2570_v12 = vld [vmem:[%s3500_s7 + $0x8] sm:$0xff] (%p894_p13)   ;;  %v2571_v13 = vld [vmem:[%s3500_s7 + $0x40] sm:$0xff] (%p894_p13)  }
 0x672   :  { %2247 = vmatpush3.bf16.msra.mxu0 %v2560_v63  ;;  %v2572_v32 = vld [vmem:[%s3500_s7] sm:$0xff]   ;;  %s2725_s7 = smov 0  }
 0x673   :  { %2248 = vmatprep.subr.bf16.mxu0 %v2561_v0 }
 0x676   :  { %2249 = vmatpush3.bf16.msra.mxu0 %v2562_v3 }
 0x677   :  { %2250 = vmatprep.subr.bf16.mxu0 %v2563_v5 }
 0x678   :  { %v904_v61 = vld [vmem:[#allocation2] sm:$0xff]  ;;  %v905_v55 = vld [vmem:[#allocation2 + $0x8] sm:$0xff]  ;;  %v907_v1 = vld [vmem:[#allocation2 + $0x18] sm:$0xff] }
 0x679   :  { %924 = vrot.lane.b32.xlu1 %v904_v61, %s2752_s5  ;;  %912 = vrot.lane.b32.xlu0 %v904_v61, %s2750_s24  ;;  %v906_v2 = vld [vmem:[#allocation2 + $0x10] sm:$0xff] }
 0x67a   :  { %2251 = vmatpush3.bf16.msra.mxu0 %v2564_v6 }
 0x67b   :  { %2252 = vmatprep.subr.bf16.mxu0 %v2565_v7 }
 0x67d   :  { %926 = vrot.lane.b32.xlu1 %v905_v55, %s2752_s5  ;;  %914 = vrot.lane.b32.xlu0 %v905_v55, %s2750_s24 }
 0x67e   :  { %2253 = vmatpush3.bf16.msra.mxu0 %v2566_v8 }
 0x67f   :  { %2254 = vmatprep.subr.bf16.mxu0 %v2567_v9 }
 0x681   :  { %938 = vrot.lane.b32.xlu1 %v905_v55, %s2754_s29  ;;  %936 = vrot.lane.b32.xlu0 %v904_v61, %s2754_s29 }
 0x682   :  { %2255 = vmatpush3.bf16.msra.mxu0 %v2568_v10 }
 0x683   :  { %2256 = vmatprep.subr.bf16.mxu0 %v2569_v11 }
 0x685   :  { %918 = vrot.lane.b32.xlu1 %v907_v1, %s2750_s24  ;;  %916 = vrot.lane.b32.xlu0 %v906_v2, %s2750_s24 }
 0x686   :  { %2257 = vmatpush3.bf16.msra.mxu0 %v2570_v12 }
 0x687   :  { %2258 = vmatprep.subr.bf16.mxu0 %v2571_v13 }
 0x689   :  { %930 = vrot.lane.b32.xlu1 %v907_v1, %s2752_s5  ;;  %928 = vrot.lane.b32.xlu0 %v906_v2, %s2752_s5 }
 0x68a   :  { %2259 = vmatpush3.bf16.msra.mxu0 %v2572_v32 }
 0x68d   :  { %942 = vrot.lane.b32.xlu1 %v907_v1, %s2754_s29  ;;  %940 = vrot.lane.b32.xlu0 %v906_v2, %s2754_s29 }
 0x691   :  { %1151 = vperm.xlu0 %2555, %v3116_v54   ;;  %1156 = vperm.xlu1 %2556, %v3118_v56  }
 0x695   :  { %1161 = vperm.xlu1 %2556, %v3120_v58   ;;  %1166 = vperm.xlu0 %2555, %v3122_v59  }
 0x6eb   :  { %v925_v31 = vpop.permute.xlu1 %924  ;;  %v913_v14 = vpop.permute.xlu0 %912 }
 0x6ec   :  { %v948_v17 = vsel %vm336_vm5, %v904_v61, %v913_v14 }
 0x6ed   :  { %v952_v19 = vsel %vm346_vm8, %v948_v17, %v925_v31 }
 0x6ef   :  { %v927_v15 = vpop.permute.xlu1 %926  ;;  %v915_v16 = vpop.permute.xlu0 %914 }
 0x6f0   :  { %v949_v35 = vsel %vm336_vm5, %v905_v55, %v915_v16 }
 0x6f1   :  { %v953_v18 = vsel %vm346_vm8, %v949_v35, %v927_v15 }
 0x6f3   :  { %v939_v36 = vpop.permute.xlu1 %938  ;;  %v937_v20 = vpop.permute.xlu0 %936 }
 0x6f4   :  { %v957_v21 = vsel %vm356_vm10, %v953_v18, %v939_v36  ;;  %v956_v22 = vsel %vm356_vm10, %v952_v19, %v937_v20 }
 0x6f5   :  { %v962_v23 = vmul.f32 %v2908_v44, %v957_v21  ;;  %v963_v24 = vmul.f32 %v2911_v45, %v957_v21  ;;  %v960_v25 = vmul.f32 %v2914_v47, %v956_v22  ;;  %v961_v26 = vmul.f32 %v2917_v49, %v956_v22 }
 0x6f7   :  { %v968_v27 = vpack.c.bf16 %v962_v23, %v960_v25  ;;  %v919_v28 = vpop.permute.xlu1 %918  ;;  %v917_v29 = vpop.permute.xlu0 %916  ;;  %v969_v33 = vpack.c.bf16 %v963_v24, %v961_v26 }
 0x6f8   :  { %v951_v38 = vsel %vm336_vm5, %v907_v1, %v919_v28  ;;  %v950_v39 = vsel %vm336_vm5, %v906_v2, %v917_v29 }
 0x6f9   :  { %1132 = vmatprep.mubr.bf16.mxu0 %v969_v33 }
 0x6fa   :  { %1133 = vmatmul.mubr.bf16.vlgmr.msra.gmra.mxu0 %v968_v27 }
 0x6fb   :  { %v931_v34 = vpop.permute.xlu1 %930  ;;  %v929_v37 = vpop.permute.xlu0 %928 }
 0x6fc   :  { %v955_v40 = vsel %vm346_vm8, %v951_v38, %v931_v34  ;;  %v954_v41 = vsel %vm346_vm8, %v950_v39, %v929_v37 }
 0x6ff   :  { %v943_v42 = vpop.permute.xlu1 %942  ;;  %v941_v43 = vpop.permute.xlu0 %940 }
 0x700   :  { %v959_v46 = vsel %vm356_vm10, %v955_v40, %v943_v42  ;;  %v958_v48 = vsel %vm356_vm10, %v954_v41, %v941_v43 }
 0x701   :  { %v966_v54 = vmul.f32 %v2920_v50, %v959_v46  ;;  %v967_v56 = vmul.f32 %v2923_v51, %v959_v46  ;;  %v964_v58 = vmul.f32 %v2926_v52, %v958_v48  ;;  %v965_v59 = vmul.f32 %v2929_v53, %v958_v48 }
 0x703   :  { %v970_v60 = vpack.c.bf16 %v966_v54, %v964_v58  ;;  %v971_v61 = vpack.c.bf16 %v967_v56, %v965_v59 }
 0x705   :  { %1140 = vmatprep.mubr.bf16.mxu0 %v971_v61 }
 0x706   :  { %1141 = vmatmul.mubr.bf16.gmra.mxu0 %v970_v60 }
 0x70c   :  { %v3235_v62 = vpop.permute.xlu0 %1151  ;;  %v3238_v2 = vpop.permute.xlu1 %1156 }
 0x710   :  { %v3243_v8 = vpop.permute.xlu1 %1161  ;;  %v3247_v32 = vpop.permute.xlu0 %1166 }
 0x7ba   :  { %v2260_v55 = vpop.f32.mrf.mxu0 }
 0x7bc   :  { %v2261_v57 = vpop.f32.mrf.mxu0 }
 0x7bd   :  { %v2262_v4 = vadd.f32 %v2261_v57, %v2260_v55 }
 0x7be   :  { %v2263_v63 = vpop.f32.mrf.mxu0 }
 0x7bf   :  { %v1169_v0 = vmul.f32 %v2262_v4, %v3235_v62 }
 0x7c0   :  { %v2264_v1 = vpop.f32.mrf.mxu0 }
 0x7c1   :  { %1173 = vst.msk [vmem:[#allocation4] sm:$0xff] %vm336_vm5, %v1169_v0  ;;  %v2265_v3 = vadd.f32 %v2264_v1, %v2263_v63 }
 0x7c3   :  { %v1170_v5 = vmul.f32 %v2265_v3, %v3238_v2 }
 0x7c5   :  { %1174 = vst.msk [vmem:[#allocation4 + $0x8] sm:$0xff] %vm336_vm5, %v1170_v5 }
 0x7c6   :  { %v2266_v6 = vpop.f32.mrf.mxu0 }
 0x7c8   :  { %v2267_v7 = vpop.f32.mrf.mxu0 }
 0x7c9   :  { %v2268_v9 = vadd.f32 %v2267_v7, %v2266_v6 }
 0x7ca   :  { %v2269_v10 = vpop.f32.mrf.mxu0 }
 0x7cb   :  { %v1171_v11 = vmul.f32 %v2268_v9, %v3243_v8 }
 0x7cc   :  { %v2270_v12 = vpop.f32.mrf.mxu0 }
 0x7cd   :  { %1175 = vst.msk [vmem:[#allocation4 + $0x10] sm:$0xff] %vm336_vm5, %v1171_v11  ;;  %v2271_v13 = vadd.f32 %v2270_v12, %v2269_v10 }
 0x7cf   :  { %v1172_v31 = vmul.f32 %v2271_v13, %v3247_v32 }
 0x7d1   :  { %1176 = vst.msk [vmem:[#allocation4 + $0x18] sm:$0xff] %vm336_vm5, %v1172_v31 }
 0x7d2 LB: > { %s1185_s19 = sld [smem:[#allocation10 + %s2727_s7]]  ;;  %s1188_s22 = scalar_lea.vmem [#allocation4], %s2727_s7  ;;  %s2727_s7 = sphi %s2725_s7, %s1184_s7  }
 0x7d3   : > { %s1184_s7 = sadd.s32 1, %s2727_s7  }
 0x7d4   : > { %p1181_p0 = scmp.ge.s32.totalorder %s1184_s7, 32  }
 0x7d5   :  { %2387 = vmatprep.subr.bf16.mxu1 (%p1181_p0), %v2748_v30  ;;  %v2573_v17 = vld [vmem:[%s3501_s8 + $0x8] sm:$0xff] (%p1181_p0)   ;;  %2391 = vmatprep.mubr.msk.bf16.mxu1 (%p1181_p0), %vm2756_vm13, %v2748_v30  ;;  %v2574_v35 = vld [vmem:[%s3501_s8] sm:$0xff] (%p1181_p0)   ;;  %v1193_v36 = vld [vmem:[#allocation12] sm:$0xff] (%p1181_p0)  ;;  %vm1279_vm15 = vcmask (%p1181_p0), 523520   ;;  %s2729_s8 = smov (%p1181_p0), 0  }
 0x7d6   :  { %2388 = vmatpush3.bf16.msra.mxu1 (%p1181_p0), %v2573_v17  ;;  %v1194_v18 = vld [vmem:[#allocation12 + $0x8] sm:$0xff] (%p1181_p0) }
 0x7d7   :  { %2389 = vmatprep.subr.bf16.mxu1 (%p1181_p0), %v2748_v30  ;;  %v1206_v19 = vpack.c.bf16 (%p1181_p0), %v1194_v18, %v1193_v36  ;;  %v2176_v21 = vld [vmem:[%s3502_s9] ss:$0 sm:$0xff] (%p1181_p0) }
 0x7d8   : > { %v1189_v14 = vld [vmem:[%s1188_s22] sm:$0x1]  ;;  %s1186_s23 = scalar_lea.vmem [#allocation5], %s1185_s19  ;;  %1183 = sbr.rel (!%p1181_p0) target bundleno = 2002 (0x7d2), region = 243 }
 0x7d9   : > { %v1187_v15 = vld [vmem:[%s1186_s23] sm:$0x1] }
 0x7da   : > { %v1190_v16 = vadd.f32 %v1189_v14, %v1187_v15  ;;  %2390 = vmatpush3.bf16.msra.mxu1 (%p1181_p0), %v2574_v35 }
 0x7dc   : > { %1192 = vst.msk [vmem:[%s1186_s23] sm:$0x1] %vm503_vm12, %v1190_v16 }
 0x7dd   :  { %2392 = vmatmul.mubr.msk.bf16.vlgmr.msra.gmra.mxu1 %vm336_vm5, %v1206_v19 }
 0x7e3   :  { %v1195_v20 = vld [vmem:[#allocation5] sm:$0xff]  ;;  %v1196_v23 = vld [vmem:[#allocation5 + $0x8] sm:$0xff] }
 0x7e4   :  { %v1204_v22 = vadd.f32 %v2176_v21, %v1195_v20  ;;  %v1205_v26 = vadd.f32 %v2176_v21, %v1196_v23 }
 0x89d   :  { %v1260_v24 = vpop.f32.mrf.mxu1 }
 0x89e   :  { %v1267_v25 = vadd.f32 %v1260_v24, %v1204_v22 }
 0x89f   :  { %v2393_v27 = vpop.f32.mrf.mxu1 }
 0x8a0   :  { %2575 = vtanh.f32 %v1267_v25 }
 0x8a1   :  { %v1263_v28 = vpop.f32.mrf.mxu1 }
 0x8a2   :  { %v1268_v29 = vadd.f32 %v1263_v28, %v1205_v26 }
 0x8a3   :  { %v2394_v33 = vpop.f32.mrf.mxu1 }
 0x8a4   :  { %2577 = vtanh.f32 %v1268_v29 }
 0x8ad   :  { %v2576_v34 = vpop.eup %2575 }
 0x8ae   :  { %1273 = vrot.lane.b32.xlu0 %v2576_v34, %s2750_s24 }
 0x8b1   :  { %v2578_v37 = vpop.eup %2577 }
 0x8b2   :  { %1275 = vrot.lane.b32.xlu0 %v2578_v37, %s2750_s24 }
 0x920   :  { %v1274_v38 = vpop.permute.xlu0 %1273 }
 0x921   :  { %1280 = vst.msk [vmem:[#allocation12] sm:$0xff] %vm1279_vm15, %v1274_v38 }
 0x924   :  { %v1276_v39 = vpop.permute.xlu0 %1275 }
 0x925   :  { %1281 = vst.msk [vmem:[#allocation12 + $0x8] sm:$0xff] %vm1279_vm15, %v1276_v39 }
 0x926 LB: > { %s1288_s9 = sld [smem:[#allocation7 + %s2731_s8]]  ;;  %s2757_s3 = smov 96   ;;  %s2731_s8 = sphi %s2729_s8, %s1287_s8  }
 0x927   : > { %s1295_s28 = scalar_lea.vmem [#allocation2], %s2731_s8  ;;  %s1287_s8 = sadd.s32 1, %s2731_s8  }
 0x928   : > { %p1284_p1 = scmp.ge.s32.totalorder %s1287_s8, 32  }
 0x929   :  { %1551 = vst.msk [vmem:[#allocation5] sm:$0xff] (%p1284_p1), %vm336_vm5, %v2748_v30  ;;  %1552 = vst.msk [vmem:[#allocation5 + $0x8] sm:$0xff] (%p1284_p1), %vm336_vm5, %v2748_v30  ;;  %v2579_v46 = vld [vmem:[%s3503_s10 + $0x78] sm:$0xff] (%p1284_p1)   ;;  %v2581_v54 = vld [vmem:[%s3503_s10 + $0x70] sm:$0xff] (%p1284_p1)  }
 0x92a   :  { %v2580_v48 = vld [vmem:[%s3503_s10 + $0x38] sm:$0xff] (%p1284_p1)   ;;  %2275 = vmatprep.subr.bf16.mxu1 (%p1284_p1), %v2579_v46  ;;  %v2582_v56 = vld [vmem:[%s3503_s10 + $0x30] sm:$0xff] (%p1284_p1)   ;;  %v2583_v58 = vld [vmem:[%s3503_s10 + $0x68] sm:$0xff] (%p1284_p1)  }
 0x92b   :  { %2276 = vmatpush3.bf16.msra.mxu1 (%p1284_p1), %v2580_v48  ;;  %v2584_v61 = vld [vmem:[%s3503_s10 + $0x28] sm:$0xff] (%p1284_p1)   ;;  %v2585_v55 = vld [vmem:[%s3503_s10 + $0x60] sm:$0xff] (%p1284_p1)   ;;  %v2587_v4 = vld [vmem:[%s3503_s10 + $0x58] sm:$0xff] (%p1284_p1)  }
 0x92c   : > { %s1289_s18 = scalar_lea.vmem [#allocation12], %s1288_s9  ;;  %2277 = vmatprep.subr.bf16.mxu1 (%p1284_p1), %v2581_v54  ;;  %v2586_v57 = vld [vmem:[%s3503_s10 + $0x20] sm:$0xff] (%p1284_p1)   ;;  %v2588_v63 = vld [vmem:[%s3503_s10 + $0x18] sm:$0xff] (%p1284_p1)   ;;  %v2589_v0 = vld [vmem:[%s3503_s10 + $0x50] sm:$0xff] (%p1284_p1)  }
 0x92d   : > { %v1290_v40 = vld [vmem:[%s1289_s18] sm:$0x1]  ;;  %v2590_v1 = vld [vmem:[%s3503_s10 + $0x10] sm:$0xff] (%p1284_p1)   ;;  %v2591_v3 = vld [vmem:[%s3503_s10 + $0x48] sm:$0xff] (%p1284_p1)  }
 0x92e   : > { %1292 = vrot.lane.b32.xlu0 %v1290_v40, %s2757_s3  ;;  %v2592_v5 = vld [vmem:[%s3503_s10 + $0x8] sm:$0xff] (%p1284_p1)   ;;  %v2593_v6 = vld [vmem:[%s3503_s10 + $0x40] sm:$0xff] (%p1284_p1)  }
 0x92f   :  { %2278 = vmatpush3.bf16.msra.mxu1 (%p1284_p1), %v2582_v56  ;;  %v2594_v7 = vld [vmem:[%s3503_s10] sm:$0xff] (%p1284_p1)   ;;  %s2733_s10 = smov (%p1284_p1), 0  }
 0x930   :  { %2279 = vmatprep.subr.bf16.mxu1 (%p1284_p1), %v2583_v58 }
 0x933   :  { %2280 = vmatpush3.bf16.msra.mxu1 (%p1284_p1), %v2584_v61 }
 0x934   :  { %2281 = vmatprep.subr.bf16.mxu1 (%p1284_p1), %v2585_v55 }
 0x937   :  { %2282 = vmatpush3.bf16.msra.mxu1 (%p1284_p1), %v2586_v57 }
 0x938   :  { %2283 = vmatprep.subr.bf16.mxu1 (%p1284_p1), %v2587_v4 }
 0x93b   :  { %2284 = vmatpush3.bf16.msra.mxu1 (%p1284_p1), %v2588_v63 }
 0x93c   :  { %2285 = vmatprep.subr.bf16.mxu1 (%p1284_p1), %v2589_v0 }
 0x93f   :  { %2286 = vmatpush3.bf16.msra.mxu1 (%p1284_p1), %v2590_v1 }
 0x940   :  { %2287 = vmatprep.subr.bf16.mxu1 (%p1284_p1), %v2591_v3 }
 0x943   :  { %2288 = vmatpush3.bf16.msra.mxu1 (%p1284_p1), %v2592_v5 }
 0x944   :  { %2289 = vmatprep.subr.bf16.mxu1 (%p1284_p1), %v2593_v6 }
 0x947   :  { %2290 = vmatpush3.bf16.msra.mxu1 (%p1284_p1), %v2594_v7 }
 0x99d   :  { %1286 = sbr.rel (!%p1284_p1) target bundleno = 2342 (0x926), region = 254 }
 0x9a0   : > { %v1293_v41 = vpop.permute.xlu0 %1292 }
 0x9a1   : > { %1297 = vst.msk [vmem:[%s1295_s28] sm:$0x1] %vm503_vm12, %v1293_v41 }
 0x9a8   :  { %v1298_v42 = vld [vmem:[#allocation2] sm:$0xff]  ;;  %v1299_v43 = vld [vmem:[#allocation2 + $0x8] sm:$0xff]  ;;  %v1301_v59 = vld [vmem:[#allocation2 + $0x18] sm:$0xff] }
 0x9a9   :  { %1318 = vrot.lane.b32.xlu1 %v1298_v42, %s2752_s5  ;;  %1306 = vrot.lane.b32.xlu0 %v1298_v42, %s2750_s24  ;;  %v1300_v60 = vld [vmem:[#allocation2 + $0x10] sm:$0xff] }
 0x9ad   :  { %1320 = vrot.lane.b32.xlu1 %v1299_v43, %s2752_s5  ;;  %1308 = vrot.lane.b32.xlu0 %v1299_v43, %s2750_s24 }
 0x9b1   :  { %1332 = vrot.lane.b32.xlu1 %v1299_v43, %s2754_s29  ;;  %1330 = vrot.lane.b32.xlu0 %v1298_v42, %s2754_s29 }
 0x9b5   :  { %1312 = vrot.lane.b32.xlu1 %v1301_v59, %s2750_s24  ;;  %1310 = vrot.lane.b32.xlu0 %v1300_v60, %s2750_s24 }
 0x9b9   :  { %1324 = vrot.lane.b32.xlu1 %v1301_v59, %s2752_s5  ;;  %1322 = vrot.lane.b32.xlu0 %v1300_v60, %s2752_s5 }
 0x9bd   :  { %1336 = vrot.lane.b32.xlu1 %v1301_v59, %s2754_s29  ;;  %1334 = vrot.lane.b32.xlu0 %v1300_v60, %s2754_s29 }
 0xa1b   :  { %v1319_v9 = vpop.permute.xlu1 %1318  ;;  %v1307_v10 = vpop.permute.xlu0 %1306 }
 0xa1c   :  { %v1342_v13 = vsel %vm336_vm5, %v1298_v42, %v1307_v10 }
 0xa1d   :  { %v1346_v16 = vsel %vm346_vm8, %v1342_v13, %v1319_v9 }
 0xa1f   :  { %v1321_v11 = vpop.permute.xlu1 %1320  ;;  %v1309_v12 = vpop.permute.xlu0 %1308 }
 0xa20   :  { %v1343_v31 = vsel %vm336_vm5, %v1299_v43, %v1309_v12 }
 0xa21   :  { %v1347_v15 = vsel %vm346_vm8, %v1343_v31, %v1321_v11 }
 0xa23   :  { %v1333_v14 = vpop.permute.xlu1 %1332  ;;  %v1331_v17 = vpop.permute.xlu0 %1330 }
 0xa24   :  { %v1351_v35 = vsel %vm356_vm10, %v1347_v15, %v1333_v14  ;;  %v1350_v36 = vsel %vm356_vm10, %v1346_v16, %v1331_v17 }
 0xa25   :  { %v1356_v18 = vmul.f32 %v2908_v44, %v1351_v35  ;;  %v1357_v19 = vmul.f32 %v2911_v45, %v1351_v35  ;;  %v1354_v20 = vmul.f32 %v2914_v47, %v1350_v36  ;;  %v1355_v21 = vmul.f32 %v2917_v49, %v1350_v36 }
 0xa27   :  { %v1362_v22 = vpack.c.bf16 %v1356_v18, %v1354_v20  ;;  %v1313_v23 = vpop.permute.xlu1 %1312  ;;  %v1311_v24 = vpop.permute.xlu0 %1310  ;;  %v1363_v25 = vpack.c.bf16 %v1357_v19, %v1355_v21 }
 0xa28   :  { %v1345_v28 = vsel %vm336_vm5, %v1301_v59, %v1313_v23  ;;  %v1344_v29 = vsel %vm336_vm5, %v1300_v60, %v1311_v24 }
 0xa29   :  { %1526 = vmatprep.mubr.bf16.mxu1 %v1363_v25 }
 0xa2a   :  { %1527 = vmatmul.mubr.bf16.vlgmr.msra.gmra.mxu1 %v1362_v22 }
 0xa2b   :  { %v1325_v26 = vpop.permute.xlu1 %1324  ;;  %v1323_v27 = vpop.permute.xlu0 %1322 }
 0xa2c   :  { %v1349_v33 = vsel %vm346_vm8, %v1345_v28, %v1325_v26  ;;  %v1348_v34 = vsel %vm346_vm8, %v1344_v29, %v1323_v27 }
 0xa2f   :  { %v1337_v37 = vpop.permute.xlu1 %1336  ;;  %v1335_v38 = vpop.permute.xlu0 %1334 }
 0xa30   :  { %v1353_v39 = vsel %vm356_vm10, %v1349_v33, %v1337_v37  ;;  %v1352_v40 = vsel %vm356_vm10, %v1348_v34, %v1335_v38 }
 0xa31   :  { %v1360_v41 = vmul.f32 %v2920_v50, %v1353_v39  ;;  %v1361_v42 = vmul.f32 %v2923_v51, %v1353_v39  ;;  %v1358_v43 = vmul.f32 %v2926_v52, %v1352_v40  ;;  %v1359_v46 = vmul.f32 %v2929_v53, %v1352_v40 }
 0xa33   :  { %v1364_v48 = vpack.c.bf16 %v1360_v41, %v1358_v43  ;;  %v1365_v54 = vpack.c.bf16 %v1361_v42, %v1359_v46 }
 0xa35   :  { %1534 = vmatprep.mubr.bf16.mxu1 %v1365_v54 }
 0xa36   :  { %1535 = vmatmul.mubr.bf16.gmra.mxu1 %v1364_v48 }
 0xaea   :  { %v2291_v56 = vpop.f32.mrf.mxu1 }
 0xaec   :  { %v2292_v58 = vpop.f32.mrf.mxu1 }
 0xaed   :  { %v2293_v59 = vadd.f32 %v2292_v58, %v2291_v56 }
 0xaee   :  { %v2294_v60 = vpop.f32.mrf.mxu1 }
 0xaef   :  { %v1543_v61 = vmul.f32 %v2293_v59, %v3235_v62 }
 0xaf0   :  { %v2295_v55 = vpop.f32.mrf.mxu1 }
 0xaf1   :  { %1547 = vst.msk [vmem:[#allocation4] sm:$0xff] %vm336_vm5, %v1543_v61  ;;  %v2296_v57 = vadd.f32 %v2295_v55, %v2294_v60 }
 0xaf3   :  { %v1544_v4 = vmul.f32 %v2296_v57, %v3238_v2 }
 0xaf5   :  { %1548 = vst.msk [vmem:[#allocation4 + $0x8] sm:$0xff] %vm336_vm5, %v1544_v4 }
 0xaf6   :  { %v2297_v63 = vpop.f32.mrf.mxu1 }
 0xaf8   :  { %v2298_v0 = vpop.f32.mrf.mxu1 }
 0xaf9   :  { %v2299_v1 = vadd.f32 %v2298_v0, %v2297_v63 }
 0xafa   :  { %v2300_v3 = vpop.f32.mrf.mxu1 }
 0xafb   :  { %v1545_v5 = vmul.f32 %v2299_v1, %v3243_v8 }
 0xafc   :  { %v2301_v6 = vpop.f32.mrf.mxu1 }
 0xafd   :  { %1549 = vst.msk [vmem:[#allocation4 + $0x10] sm:$0xff] %vm336_vm5, %v1545_v5  ;;  %v2302_v7 = vadd.f32 %v2301_v6, %v2300_v3 }
 0xaff   :  { %v1546_v9 = vmul.f32 %v2302_v7, %v3247_v32 }
 0xb01   :  { %1550 = vst.msk [vmem:[#allocation4 + $0x18] sm:$0xff] %vm336_vm5, %v1546_v9 }
 0xb02 LB: > { %s1559_s21 = sld [smem:[#allocation10 + %s2735_s10]]  ;;  %s1562_s2 = scalar_lea.vmem [#allocation4], %s2735_s10  ;;  %s2735_s10 = sphi %s2733_s10, %s1558_s10  }
 0xb03   : > { %s1558_s10 = sadd.s32 1, %s2735_s10  }
 0xb04   : > { %p1555_p2 = scmp.ge.s32.totalorder %s1558_s10, 32  }
 0xb05   :  { %v1567_v13 = vld [vmem:[#allocation12] sm:$0xff] (%p1555_p2)  ;;  %v1568_v31 = vld [vmem:[#allocation12 + $0x8] sm:$0xff] (%p1555_p2)  ;;  %2395 = vmatprep.subr.bf16.mxu0 (%p1555_p2), %v2748_v30  ;;  %2399 = vmatprep.mubr.msk.bf16.mxu0 (%p1555_p2), %vm2756_vm13, %v2748_v30  ;;  %v2595_v15 = vld [vmem:[%s3504_s11 + $0x8] sm:$0xff] (%p1555_p2)   ;;  %vm1656_vm0 = vcmask (%p1555_p2), 785920  }
 0xb06   :  { %v1580_v14 = vpack.c.bf16 (%p1555_p2), %v1568_v31, %v1567_v13  ;;  %2396 = vmatpush3.bf16.msra.mxu0 (%p1555_p2), %v2595_v15  ;;  %v2596_v16 = vld [vmem:[%s3504_s11] sm:$0xff] (%p1555_p2)   ;;  %s2737_s11 = smov (%p1555_p2), 0  }
 0xb07   :  { %2397 = vmatprep.subr.bf16.mxu0 (%p1555_p2), %v2748_v30  ;;  %v2196_v36 = vld [vmem:[%s3505_s12] ss:$0 sm:$0xff] (%p1555_p2) }
 0xb08   : > { %v1563_v10 = vld [vmem:[%s1562_s2] sm:$0x1]  ;;  %s1560_s25 = scalar_lea.vmem [#allocation5], %s1559_s21  ;;  %1557 = sbr.rel (!%p1555_p2) target bundleno = 2818 (0xb02), region = 265  ;;  %1586 = vrot.lane.b32.xlu0 (%p1555_p2), %v1580_v14, %s2754_s29 }
 0xb09   : > { %v1561_v11 = vld [vmem:[%s1560_s25] sm:$0x1] }
 0xb0a   : > { %v1564_v12 = vadd.f32 %v1563_v10, %v1561_v11  ;;  %2398 = vmatpush3.bf16.msra.mxu0 (%p1555_p2), %v2596_v16 }
 0xb0c   : > { %1566 = vst.msk [vmem:[%s1560_s25] sm:$0x1] %vm503_vm12, %v1564_v12 }
 0xb13   :  { %v1569_v35 = vld [vmem:[#allocation5] sm:$0xff]  ;;  %v1570_v19 = vld [vmem:[#allocation5 + $0x8] sm:$0xff] }
 0xb14   :  { %v1578_v18 = vadd.f32 %v2196_v36, %v1569_v35  ;;  %v1579_v22 = vadd.f32 %v2196_v36, %v1570_v19 }
 0xb7a   :  { %v1587_v17 = vpop.permute.xlu0 %1586 }
 0xb7b   :  { %2400 = vmatmul.mubr.msk.bf16.vlgmr.msra.gmra.mxu0 %vm336_vm5, %v1587_v17 }
 0xc3b   :  { %v1637_v20 = vpop.f32.mrf.mxu0 }
 0xc3c   :  { %v1644_v21 = vadd.f32 %v1637_v20, %v1578_v18 }
 0xc3d   :  { %v2401_v23 = vpop.f32.mrf.mxu0 }
 0xc3e   :  { %2597 = vtanh.f32 %v1644_v21 }
 0xc3f   :  { %v1640_v24 = vpop.f32.mrf.mxu0 }
 0xc40   :  { %v1645_v25 = vadd.f32 %v1640_v24, %v1579_v22 }
 0xc41   :  { %v2402_v26 = vpop.f32.mrf.mxu0 }
 0xc42   :  { %2599 = vtanh.f32 %v1645_v25 }
 0xc4b   :  { %v2598_v27 = vpop.eup %2597 }
 0xc4c   :  { %1650 = vrot.lane.b32.xlu0 %v2598_v27, %s2752_s5 }
 0xc4f   :  { %v2600_v28 = vpop.eup %2599 }
 0xc50   :  { %1652 = vrot.lane.b32.xlu1 %v2600_v28, %s2752_s5 }
 0xcbe   :  { %v1651_v29 = vpop.permute.xlu0 %1650 }
 0xcbf   :  { %1657 = vst.msk [vmem:[#allocation12] sm:$0xff] %vm1656_vm0, %v1651_v29 }
 0xcc2   :  { %v1653_v33 = vpop.permute.xlu1 %1652 }
 0xcc3   :  { %1658 = vst.msk [vmem:[#allocation12 + $0x8] sm:$0xff] %vm1656_vm0, %v1653_v33 }
 0xcc4 LB: > { %s1665_s12 = sld [smem:[#allocation7 + %s2739_s11]]  ;;  %s2758_s0 = smov 64   ;;  %s2739_s11 = sphi %s2737_s11, %s1664_s11  }
 0xcc5   : > { %s1672_s26 = scalar_lea.vmem [#allocation2], %s2739_s11  ;;  %s1664_s11 = sadd.s32 1, %s2739_s11  }
 0xcc6   : > { %p1661_p3 = scmp.ge.s32.totalorder %s1664_s11, 32  }
 0xcc7   :  { %1928 = vst.msk [vmem:[#allocation5] sm:$0xff] (%p1661_p3), %vm336_vm5, %v2748_v30  ;;  %1929 = vst.msk [vmem:[#allocation5 + $0x8] sm:$0xff] (%p1661_p3), %vm336_vm5, %v2748_v30  ;;  %v2601_v40 = vld [vmem:[%s3506_s13 + $0x78] sm:$0xff] (%p1661_p3)   ;;  %v2603_v42 = vld [vmem:[%s3506_s13 + $0x70] sm:$0xff] (%p1661_p3)  }
 0xcc8   :  { %v2602_v41 = vld [vmem:[%s3506_s13 + $0x38] sm:$0xff] (%p1661_p3)   ;;  %2306 = vmatprep.subr.bf16.mxu1 (%p1661_p3), %v2601_v40  ;;  %v2604_v43 = vld [vmem:[%s3506_s13 + $0x30] sm:$0xff] (%p1661_p3)   ;;  %v2605_v46 = vld [vmem:[%s3506_s13 + $0x68] sm:$0xff] (%p1661_p3)  }
 0xcc9   :  { %2307 = vmatpush3.bf16.msra.mxu1 (%p1661_p3), %v2602_v41  ;;  %v2606_v56 = vld [vmem:[%s3506_s13 + $0x28] sm:$0xff] (%p1661_p3)   ;;  %v2607_v58 = vld [vmem:[%s3506_s13 + $0x60] sm:$0xff] (%p1661_p3)   ;;  %v2609_v60 = vld [vmem:[%s3506_s13 + $0x58] sm:$0xff] (%p1661_p3)  }
 0xcca   : > { %s1666_s28 = scalar_lea.vmem [#allocation12], %s1665_s12  ;;  %2308 = vmatprep.subr.bf16.mxu1 (%p1661_p3), %v2603_v42  ;;  %v2608_v59 = vld [vmem:[%s3506_s13 + $0x20] sm:$0xff] (%p1661_p3)   ;;  %v2610_v61 = vld [vmem:[%s3506_s13 + $0x18] sm:$0xff] (%p1661_p3)   ;;  %v2611_v55 = vld [vmem:[%s3506_s13 + $0x50] sm:$0xff] (%p1661_p3)  }
 0xccb   : > { %v1667_v34 = vld [vmem:[%s1666_s28] sm:$0x1]  ;;  %v2612_v57 = vld [vmem:[%s3506_s13 + $0x10] sm:$0xff] (%p1661_p3)   ;;  %v2613_v4 = vld [vmem:[%s3506_s13 + $0x48] sm:$0xff] (%p1661_p3)  }
 0xccc   : > { %1669 = vrot.lane.b32.xlu0 %v1667_v34, %s2758_s0  ;;  %v2614_v63 = vld [vmem:[%s3506_s13 + $0x8] sm:$0xff] (%p1661_p3)   ;;  %v2615_v0 = vld [vmem:[%s3506_s13 + $0x40] sm:$0xff] (%p1661_p3)  }
 0xccd   :  { %2309 = vmatpush3.bf16.msra.mxu1 (%p1661_p3), %v2604_v43  ;;  %v2616_v1 = vld [vmem:[%s3506_s13] sm:$0xff] (%p1661_p3)   ;;  %s2741_s13 = smov (%p1661_p3), 0  }
 0xcce   :  { %2310 = vmatprep.subr.bf16.mxu1 (%p1661_p3), %v2605_v46 }
 0xcd1   :  { %2311 = vmatpush3.bf16.msra.mxu1 (%p1661_p3), %v2606_v56 }
 0xcd2   :  { %2312 = vmatprep.subr.bf16.mxu1 (%p1661_p3), %v2607_v58 }
 0xcd5   :  { %2313 = vmatpush3.bf16.msra.mxu1 (%p1661_p3), %v2608_v59 }
 0xcd6   :  { %2314 = vmatprep.subr.bf16.mxu1 (%p1661_p3), %v2609_v60 }
 0xcd9   :  { %2315 = vmatpush3.bf16.msra.mxu1 (%p1661_p3), %v2610_v61 }
 0xcda   :  { %2316 = vmatprep.subr.bf16.mxu1 (%p1661_p3), %v2611_v55 }
 0xcdd   :  { %2317 = vmatpush3.bf16.msra.mxu1 (%p1661_p3), %v2612_v57 }
 0xcde   :  { %2318 = vmatprep.subr.bf16.mxu1 (%p1661_p3), %v2613_v4 }
 0xce1   :  { %2319 = vmatpush3.bf16.msra.mxu1 (%p1661_p3), %v2614_v63 }
 0xce2   :  { %2320 = vmatprep.subr.bf16.mxu1 (%p1661_p3), %v2615_v0 }
 0xce5   :  { %2321 = vmatpush3.bf16.msra.mxu1 (%p1661_p3), %v2616_v1 }
 0xd3b   :  { %1663 = sbr.rel (!%p1661_p3) target bundleno = 3268 (0xcc4), region = 276 }
 0xd3e   : > { %v1670_v37 = vpop.permute.xlu0 %1669 }
 0xd3f   : > { %1674 = vst.msk [vmem:[%s1672_s26] sm:$0x1] %vm503_vm12, %v1670_v37 }
 0xd46   :  { %v1675_v38 = vld [vmem:[#allocation2] sm:$0xff]  ;;  %v1676_v39 = vld [vmem:[#allocation2 + $0x8] sm:$0xff]  ;;  %v1678_v48 = vld [vmem:[#allocation2 + $0x18] sm:$0xff] }
 0xd47   :  { %1695 = vrot.lane.b32.xlu1 %v1675_v38, %s2752_s5  ;;  %1683 = vrot.lane.b32.xlu0 %v1675_v38, %s2750_s24  ;;  %v1677_v54 = vld [vmem:[#allocation2 + $0x10] sm:$0xff] }
 0xd4b   :  { %1697 = vrot.lane.b32.xlu1 %v1676_v39, %s2752_s5  ;;  %1685 = vrot.lane.b32.xlu0 %v1676_v39, %s2750_s24 }
 0xd4f   :  { %1709 = vrot.lane.b32.xlu1 %v1676_v39, %s2754_s29  ;;  %1707 = vrot.lane.b32.xlu0 %v1675_v38, %s2754_s29 }
 0xd53   :  { %1689 = vrot.lane.b32.xlu1 %v1678_v48, %s2750_s24  ;;  %1687 = vrot.lane.b32.xlu0 %v1677_v54, %s2750_s24 }
 0xd57   :  { %1701 = vrot.lane.b32.xlu1 %v1678_v48, %s2752_s5  ;;  %1699 = vrot.lane.b32.xlu0 %v1677_v54, %s2752_s5 }
 0xd5b   :  { %1713 = vrot.lane.b32.xlu1 %v1678_v48, %s2754_s29  ;;  %1711 = vrot.lane.b32.xlu0 %v1677_v54, %s2754_s29 }
 0xdb9   :  { %v1696_v3 = vpop.permute.xlu1 %1695  ;;  %v1684_v5 = vpop.permute.xlu0 %1683 }
 0xdba   :  { %v1719_v9 = vsel %vm336_vm5, %v1675_v38, %v1684_v5 }
 0xdbb   :  { %v1723_v13 = vsel %vm346_vm8, %v1719_v9, %v1696_v3 }
 0xdbd   :  { %v1698_v6 = vpop.permute.xlu1 %1697  ;;  %v1686_v7 = vpop.permute.xlu0 %1685 }
 0xdbe   :  { %v1720_v10 = vsel %vm336_vm5, %v1676_v39, %v1686_v7 }
 0xdbf   :  { %v1724_v12 = vsel %vm346_vm8, %v1720_v10, %v1698_v6 }
 0xdc1   :  { %v1710_v11 = vpop.permute.xlu1 %1709  ;;  %v1708_v31 = vpop.permute.xlu0 %1707 }
 0xdc2   :  { %v1728_v14 = vsel %vm356_vm10, %v1724_v12, %v1710_v11  ;;  %v1727_v15 = vsel %vm356_vm10, %v1723_v13, %v1708_v31 }
 0xdc3   :  { %v1733_v16 = vmul.f32 %v2908_v44, %v1728_v14  ;;  %v1734_v17 = vmul.f32 %v2911_v45, %v1728_v14  ;;  %v1731_v35 = vmul.f32 %v2914_v47, %v1727_v15  ;;  %v1732_v36 = vmul.f32 %v2917_v49, %v1727_v15 }
 0xdc5   :  { %v1739_v18 = vpack.c.bf16 %v1733_v16, %v1731_v35  ;;  %v1690_v19 = vpop.permute.xlu1 %1689  ;;  %v1688_v20 = vpop.permute.xlu0 %1687  ;;  %v1740_v21 = vpack.c.bf16 %v1734_v17, %v1732_v36 }
 0xdc6   :  { %v1722_v24 = vsel %vm336_vm5, %v1678_v48, %v1690_v19  ;;  %v1721_v25 = vsel %vm336_vm5, %v1677_v54, %v1688_v20 }
 0xdc7   :  { %1903 = vmatprep.mubr.bf16.mxu1 %v1740_v21 }
 0xdc8   :  { %1904 = vmatmul.mubr.bf16.vlgmr.msra.gmra.mxu1 %v1739_v18 }
 0xdc9   :  { %v1702_v22 = vpop.permute.xlu1 %1701  ;;  %v1700_v23 = vpop.permute.xlu0 %1699 }
 0xdca   :  { %v1726_v44 = vsel %vm346_vm8, %v1722_v24, %v1702_v22  ;;  %v1725_v45 = vsel %vm346_vm8, %v1721_v25, %v1700_v23 }
 0xdcd   :  { %v1714_v26 = vpop.permute.xlu1 %1713  ;;  %v1712_v47 = vpop.permute.xlu0 %1711 }
 0xdce   :  { %v1730_v49 = vsel %vm356_vm10, %v1726_v44, %v1714_v26  ;;  %v1729_v27 = vsel %vm356_vm10, %v1725_v45, %v1712_v47 }
 0xdcf   :  { %v1737_v28 = vmul.f32 %v2920_v50, %v1730_v49  ;;  %v1738_v29 = vmul.f32 %v2923_v51, %v1730_v49  ;;  %v1735_v33 = vmul.f32 %v2926_v52, %v1729_v27  ;;  %v1736_v34 = vmul.f32 %v2929_v53, %v1729_v27 }
 0xdd1   :  { %v1741_v37 = vpack.c.bf16 %v1737_v28, %v1735_v33  ;;  %v1742_v38 = vpack.c.bf16 %v1738_v29, %v1736_v34 }
 0xdd3   :  { %1911 = vmatprep.mubr.bf16.mxu1 %v1742_v38 }
 0xdd4   :  { %1912 = vmatmul.mubr.bf16.gmra.mxu1 %v1741_v37 }
 0xe88   :  { %v2322_v39 = vpop.f32.mrf.mxu1 }
 0xe8a   :  { %v2323_v40 = vpop.f32.mrf.mxu1 }
 0xe8b   :  { %v2324_v41 = vadd.f32 %v2323_v40, %v2322_v39 }
 0xe8c   :  { %v2325_v42 = vpop.f32.mrf.mxu1 }
 0xe8d   :  { %v1920_v43 = vmul.f32 %v2324_v41, %v3235_v62 }
 0xe8e   :  { %v2326_v46 = vpop.f32.mrf.mxu1 }
 0xe8f   :  { %1924 = vst.msk [vmem:[#allocation4] sm:$0xff] %vm336_vm5, %v1920_v43  ;;  %v2327_v50 = vadd.f32 %v2326_v46, %v2325_v42 }
 0xe91   :  { %v1921_v51 = vmul.f32 %v2327_v50, %v3238_v2 }
 0xe93   :  { %1925 = vst.msk [vmem:[#allocation4 + $0x8] sm:$0xff] %vm336_vm5, %v1921_v51 }
 0xe94   :  { %v2328_v52 = vpop.f32.mrf.mxu1 }
 0xe96   :  { %v2329_v53 = vpop.f32.mrf.mxu1 }
 0xe97   :  { %v2330_v48 = vadd.f32 %v2329_v53, %v2328_v52 }
 0xe98   :  { %v2331_v54 = vpop.f32.mrf.mxu1 }
 0xe99   :  { %v1922_v56 = vmul.f32 %v2330_v48, %v3243_v8 }
 0xe9a   :  { %v2332_v58 = vpop.f32.mrf.mxu1 }
 0xe9b   :  { %1926 = vst.msk [vmem:[#allocation4 + $0x10] sm:$0xff] %vm336_vm5, %v1922_v56  ;;  %v2333_v59 = vadd.f32 %v2332_v58, %v2331_v54 }
 0xe9d   :  { %v1923_v62 = vmul.f32 %v2333_v59, %v3247_v32 }
 0xe9f   :  { %1927 = vst.msk [vmem:[#allocation4 + $0x18] sm:$0xff] %vm336_vm5, %v1923_v62 }
 0xea0 LB: > { %s1936_s23 = sld [smem:[#allocation10 + %s2743_s13]]  ;;  %s1939_s1 = scalar_lea.vmem [#allocation4], %s2743_s13  ;;  %s2743_s13 = sphi %s2741_s13, %s1935_s13  }
 0xea1   : > { %s1935_s13 = sadd.s32 1, %s2743_s13  }
 0xea2   : > { %p1932_p4 = scmp.ge.s32.totalorder %s1935_s13, 32  }
 0xea3   :  { %v1944_v8 = vld [vmem:[#allocation12] sm:$0xff] (%p1932_p4)  ;;  %v1945_v32 = vld [vmem:[#allocation12 + $0x8] sm:$0xff] (%p1932_p4)  ;;  %2403 = vmatprep.subr.bf16.mxu0 (%p1932_p4), %v2748_v30  ;;  %2407 = vmatprep.mubr.msk.bf16.mxu0 (%p1932_p4), %vm2756_vm13, %v2748_v30  ;;  %v2617_v57 = vld [vmem:[%s3507_s14 + $0x8] sm:$0xff] (%p1932_p4)   ;;  %vm2033_vm1 = vcmask (%p1932_p4), 1048320  }
 0xea4   :  { %v1957_v55 = vpack.c.bf16 (%p1932_p4), %v1945_v32, %v1944_v8  ;;  %2404 = vmatpush3.bf16.msra.mxu0 (%p1932_p4), %v2617_v57  ;;  %v2618_v4 = vld [vmem:[%s3507_s14] sm:$0xff] (%p1932_p4)   ;;  %s2759_s14 = smov (%p1932_p4), [#allocation12]  }
 0xea5   :  { %2405 = vmatprep.subr.bf16.mxu0 (%p1932_p4), %v2748_v30  ;;  %v2216_v1 = vld [vmem:[%s3508_s15] ss:$0 sm:$0xff] (%p1932_p4)  ;;  %s2041_s15 = sshll.u32 (%p1932_p4), %s2759_s14, 4  ;;  %s2042_s15 = int_to_ptr.vmem [resolvable:$true] %s2041_s15 }
 0xea6   : > { %v1940_v2 = vld [vmem:[%s1939_s1] sm:$0x1]  ;;  %s1937_s10 = scalar_lea.vmem [#allocation5], %s1936_s23  ;;  %1934 = sbr.rel (!%p1932_p4) target bundleno = 3744 (0xea0), region = 287  ;;  %1963 = vrot.lane.b32.xlu0 (%p1932_p4), %v1957_v55, %s2752_s5 }
 0xea7   : > { %v1938_v60 = vld [vmem:[%s1937_s10] sm:$0x1]  ;;  %s2647_s5 = scalar_lea.vmem (%p1932_p4), %s2042_s15, 256  ;;  %p2652_p6 = scmp.lt.s32.totalorder (%p1932_p4), %s2042_s15, %s2042_s15 }
 0xea8   : > { %v1941_v61 = vadd.f32 %v1940_v2, %v1938_v60  ;;  %2406 = vmatpush3.bf16.msra.mxu0 (%p1932_p4), %v2618_v4  ;;  %p2648_p5 = scmp.ne.s32.totalorder (%p1932_p4), %s2042_s15, %s2647_s5  ;;  %p2653_p7 = scmp.lt.s32.totalorder (%p1932_p4), %s2647_s5, %s2647_s5 }
 0xeaa   : > { %1943 = vst.msk [vmem:[%s1937_s10] sm:$0x1] %vm503_vm12, %v1941_v61  ;;  %p2654_p8 = por (%p1932_p4), %p2653_p7, %p2652_p6 }
 0xeac   :  { %p2655_p9 = pnand %p2654_p8, %p2648_p5 }
 0xeb1   :  { %v1946_v0 = vld [vmem:[#allocation5] sm:$0xff]  ;;  %v1947_v5 = vld [vmem:[#allocation5 + $0x8] sm:$0xff] }
 0xeb2   :  { %v1955_v3 = vadd.f32 %v2216_v1, %v1946_v0  ;;  %v1956_v9 = vadd.f32 %v2216_v1, %v1947_v5 }
 0xf18   :  { %v1964_v63 = vpop.permute.xlu0 %1963 }
 0xf19   :  { %2408 = vmatmul.mubr.msk.bf16.vlgmr.msra.gmra.mxu0 %vm336_vm5, %v1964_v63 }
 0xfd9   :  { %v2014_v6 = vpop.f32.mrf.mxu0 }
 0xfda   :  { %v2021_v7 = vadd.f32 %v2014_v6, %v1955_v3 }
 0xfdb   :  { %v2409_v10 = vpop.f32.mrf.mxu0 }
 0xfdc   :  { %2619 = vtanh.f32 %v2021_v7 }
 0xfdd   :  { %v2017_v11 = vpop.f32.mrf.mxu0 }
 0xfde   :  { %v2022_v12 = vadd.f32 %v2017_v11, %v1956_v9 }
 0xfdf   :  { %v2410_v13 = vpop.f32.mrf.mxu0 }
 0xfe0   :  { %2621 = vtanh.f32 %v2022_v12 }
 0xfe9   :  { %v2620_v30 = vpop.eup %2619 }
 0xfea   :  { %2027 = vrot.lane.b32.xlu0 %v2620_v30, %s2754_s29 }
 0xfed   :  { %v2622_v31 = vpop.eup %2621 }
 0xfee   :  { %2029 = vrot.lane.b32.xlu1 %v2622_v31, %s2754_s29 }
0x105c   :  { %v2028_v14 = vpop.permute.xlu0 %2027 }
0x105d   :  { %2034 = vst.msk [vmem:[#allocation12] sm:$0xff] %vm2033_vm1, %v2028_v14 }
0x1060   :  { %v2030_v15 = vpop.permute.xlu1 %2029 }
0x1061   :  { %2035 = vst.msk [vmem:[#allocation12 + $0x8] sm:$0xff] %vm2033_vm1, %v2030_v15 }
0x1062   :  { %2658 = shalt.err (!%p2655_p9)
}
0x1063   :  { %s2760_s9 = smov 128   ;;  %s2761_s18 = smov 8  }
0x1064   :  { %2047 = dma.vmem_to_hbm [thread:$0]  %s2042_s15, 256, %s3513_s20, [#allocation8], %s2760_s9, %s2760_s9, %s2761_s18  }
0x1065   :  { %2707 = dma.done.wait [#allocation8], 256  }
0x1066   :  { %2708 = vsyncadd [#allocation8], 4294967040 }
0x1067   :  { %2055 = vsyncpa [#allocation8], 1 }
0x1068   :  { %2056 = vsyncpa [#allocation9], 1 }
0x1069   :  { %2057 = vsyncpa [#allocation11], 1 }

</bundles_post_ra>
